<compile_context>
chip_gen: v6e
topology: v6e:2x2x1
jax: 0.10.0
libtpu: 0.0.40
codegen_flags: <defaults>
</compile_context>

<pallas_src>
import functools

import jax
import jax.numpy as jnp
from jax.experimental import pallas as pl
from jax.experimental.pallas import tpu as pltpu


def _round_up(x, m):
    return ((x + m - 1) // m) * m


# ---------------------------------------------------------------------------
# Pallas kernel: fused (bf16 MXU) matmul + bias + activation
# ---------------------------------------------------------------------------
def _mm_bias_act_kernel(a_ref, w_ref, b_ref, o_ref, *, act):
    acc = jnp.dot(a_ref[...], w_ref[...], preferred_element_type=jnp.float32)
    acc = acc + b_ref[...]                     # (TM, Np) + (1, Np) broadcast, f32 epilogue
    if act == "relu":
        acc = jnp.maximum(acc, 0.0)
    elif act == "sigmoid":
        # exact reciprocal (not approx) so the output is guaranteed inside [0, 1]
        acc = 1.0 / (1.0 + jnp.exp(-acc))
    o_ref[...] = acc.astype(o_ref.dtype)


_TM_MAX = 512  # M-tile sized so 2x(A tile) + W + 2x(out tile) stays well under v7x's 64 MiB VMEM


def matmul_bias_act(a, w_p, b_p, n_valid, act="none"):
    """out[:M, :n_valid] = act(a @ W + b), as an M-tiled Pallas TPU kernel.

    `w_p` (Kp, Np) bf16 and `b_p` (1, Np) f32 are pre-padded ONCE at init.
    `a` (M, K) is padded/cast to bf16 here (fused under the surrounding jit).
    """
    M, K = a.shape
    Kp, Np = w_p.shape
    assert K <= Kp and n_valid <= Np
    Mp = _round_up(M, 16)                       # bf16 sublane packing friendly
    TM = min(Mp, _TM_MAX)

    a_p = jnp.pad(a, ((0, Mp - M), (0, Kp - K))).astype(jnp.bfloat16)

    flops = 2 * Mp * Kp * Np
    transcendentals = Mp * Np if act == "sigmoid" else 0
    bytes_accessed = Mp * Kp * 2 + Kp * Np * 2 + Np * 4 + Mp * Np * 4

    out = pl.pallas_call(
        functools.partial(_mm_bias_act_kernel, act=act),
        out_shape=jax.ShapeDtypeStruct((Mp, Np), jnp.float32),
        grid=(pl.cdiv(Mp, TM),),
        in_specs=[
            pl.BlockSpec((TM, Kp), lambda i: (i, 0)),   # A tile, pipelined over M
            pl.BlockSpec((Kp, Np), lambda i: (0, 0)),   # W resident
            pl.BlockSpec((1, Np), lambda i: (0, 0)),    # bias resident
        ],
        out_specs=pl.BlockSpec((TM, Np), lambda i: (i, 0)),
        compiler_params=pltpu.CompilerParams(
            dimension_semantics=("parallel",),
            vmem_limit_bytes=32 * 1024 * 1024,
        ),
        cost_estimate=pl.CostEstimate(
            flops=flops,
            transcendentals=transcendentals,
            bytes_accessed=bytes_accessed,
        ),
    )(a_p, w_p, b_p)
    return out[:M, :n_valid]


# ---------------------------------------------------------------------------
# NHWC im2col + conv / transposed-conv layers built on the Pallas GEMM
# ---------------------------------------------------------------------------
def _im2col_nhwc(x, k, stride, pad):
    """x: (N, H, W, C) -> (N*Ho*Wo, k*k*C) with tap-major (a, b), channel-minor order."""
    n, h, w, c = x.shape
    xp = jnp.pad(x, ((0, 0), (pad, pad), (pad, pad), (0, 0)))
    ho = (h + 2 * pad - k) // stride + 1
    wo = (w + 2 * pad - k) // stride + 1
    taps = []
    for a in range(k):
        for b in range(k):
            taps.append(xp[:, a:a + stride * ho:stride, b:b + stride * wo:stride, :])
    patches = jnp.concatenate(taps, axis=-1)            # (N, Ho, Wo, k*k*C)
    return patches.reshape(n * ho * wo, k * k * c), ho, wo


def conv2d_nhwc(x, layer, *, k, stride, pad, cout, act):
    n = x.shape[0]
    a, ho, wo = _im2col_nhwc(x, k, stride, pad)
    out = matmul_bias_act(a, layer["w"], layer["b"], cout, act=act)
    return out.reshape(n, ho, wo, cout)


def deconv2x_nhwc(x, layer, *, cout, act):
    """ConvTranspose2d(k=4, s=2, p=1) via stride^2 sub-kernel decomposition + pixel shuffle."""
    n, h, w, _ = x.shape
    a, _, _ = _im2col_nhwc(x, 3, 1, 1)                   # 3x3 stride-1 patches of the ORIGINAL input
    out = matmul_bias_act(a, layer["w"], layer["b"], 4 * cout, act=act)   # (N*H*W, 4*Cout)
    out = out.reshape(n, h, w, 2, 2, cout).transpose(0, 1, 3, 2, 4, 5)
    return out.reshape(n, 2 * h, 2 * w, cout)


# ---------------------------------------------------------------------------
# One-time conversion of PyTorch-layout params to GEMM-ready padded matrices
# ---------------------------------------------------------------------------
def _pack_gemm(w_mat, bias):
    k, n = w_mat.shape
    kp, npad = _round_up(k, 128), _round_up(n, 128)
    w_p = jnp.zeros((kp, npad), jnp.bfloat16).at[:k, :n].set(w_mat.astype(jnp.bfloat16))
    b_p = jnp.zeros((1, npad), jnp.float32).at[0, :n].set(bias.astype(jnp.float32))
    return {"w": w_p, "b": b_p}


def _conv_weight_matrix(w):
    # PyTorch Conv2d (Cout, Cin, k, k) -> ((a, b, cin), cout), matching _im2col_nhwc tap order
    cout = w.shape[0]
    return w.transpose(2, 3, 1, 0).reshape(-1, cout)


def _deconv_weight_matrix(w):
    # ConvTranspose2d(k=4, s=2, p=1): each output parity (r, c) is a 2x2 conv on the
    # pad-1 input.  Embed the four 2x2 sub-kernels into one (9*Cin, 4*Cout) matrix that
    # consumes shared 3x3 stride-1 patches; column order is (r, c, cout).
    cin, cout, k, _ = w.shape
    assert k == 4
    m = jnp.zeros((3, 3, cin, 2, 2, cout), jnp.float32)
    for r in range(2):
        for c in range(2):
            for dh in range(2):
                for dw in range(2):
                    a, b = r + dh, c + dw
                    ky, kx = 3 - r - 2 * dh, 3 - c - 2 * dw
                    m = m.at[a, b, :, r, c, :].set(w[:, :, ky, kx])
    return m.reshape(9 * cin, 4 * cout)


def prepare_gemm_params(p, image_size):
    s = image_size // 4
    latent = p["e_fc_w"].shape[0]
    g = {}
    g["c1"] = _pack_gemm(_conv_weight_matrix(p["e_conv1_w"]), p["e_conv1_b"])
    g["c2"] = _pack_gemm(_conv_weight_matrix(p["e_conv2_w"]), p["e_conv2_b"])
    # encoder fc consumes the NHWC flatten: reorder rows from PyTorch's (c,h,w) to (h,w,c)
    w = p["e_fc_w"].reshape(latent, 32, s, s).transpose(2, 3, 1, 0).reshape(s * s * 32, latent)
    g["efc"] = _pack_gemm(w, p["e_fc_b"])
    # decoder fc produces NHWC-ordered features: reorder columns (and bias) to (h,w,c)
    w = p["d_fc_w"].reshape(32, s, s, latent).transpose(3, 1, 2, 0).reshape(latent, s * s * 32)
    b = p["d_fc_b"].reshape(32, s, s).transpose(1, 2, 0).reshape(-1)
    g["dfc"] = _pack_gemm(w, b)
    g["dc1"] = _pack_gemm(_deconv_weight_matrix(p["d_deconv1_w"]), jnp.tile(p["d_deconv1_b"], 4))
    g["dc2"] = _pack_gemm(_deconv_weight_matrix(p["d_deconv2_w"]), jnp.tile(p["d_deconv2_b"], 4))
    return g


# ---------------------------------------------------------------------------
# GenericAAE parameters (PyTorch layouts) + forward
# ---------------------------------------------------------------------------
def init_params(key, latent_dim, image_size):
    ks = jax.random.split(key, 10)
    s = image_size // 4
    feat = 32 * s * s

    def norm(k, shape, fan_in):
        return jax.random.normal(k, shape, jnp.float32) * (2.0 / fan_in) ** 0.5

    return {
        # encoder
        "e_conv1_w": norm(ks[0], (16, 3, 3, 3), 3 * 9),
        "e_conv1_b": jnp.zeros((16,), jnp.float32),
        "e_conv2_w": norm(ks[1], (32, 16, 3, 3), 16 * 9),
        "e_conv2_b": jnp.zeros((32,), jnp.float32),
        "e_fc_w": norm(ks[2], (latent_dim, feat), feat),
        "e_fc_b": jnp.zeros((latent_dim,), jnp.float32),
        # decoder
        "d_fc_w": norm(ks[3], (feat, latent_dim), latent_dim),
        "d_fc_b": jnp.zeros((feat,), jnp.float32),
        "d_deconv1_w": norm(ks[4], (32, 16, 4, 4), 32 * 16),   # ConvTranspose2d layout (Cin, Cout, k, k)
        "d_deconv1_b": jnp.zeros((16,), jnp.float32),
        "d_deconv2_w": norm(ks[5], (16, 3, 4, 4), 16 * 16),
        "d_deconv2_b": jnp.zeros((3,), jnp.float32),
        # mean/std buffers exist on the module but are unused when backbone == 'conv'
        "mean": jnp.array([0.485, 0.456, 0.406], jnp.float32).reshape(1, 3, 1, 1),
        "std": jnp.array([0.229, 0.224, 0.225], jnp.float32).reshape(1, 3, 1, 1),
    }


def generic_aae_forward(gparams, x, latent_dim, image_size):
    # backbone == 'conv'  ->  no (x - mean) / std normalization
    s = image_size // 4
    n = x.shape[0]
    xh = jnp.transpose(x, (0, 2, 3, 1))                     # NCHW -> NHWC once at the boundary

    # ---- encode ----
    h = conv2d_nhwc(xh, gparams["c1"], k=3, stride=2, pad=1, cout=16, act="relu")
    h = conv2d_nhwc(h, gparams["c2"], k=3, stride=2, pad=1, cout=32, act="relu")
    z = matmul_bias_act(h.reshape(n, -1), gparams["efc"]["w"], gparams["efc"]["b"],
                        latent_dim, act="none")             # (N, latent)

    # ---- decode ----
    d = matmul_bias_act(z, gparams["dfc"]["w"], gparams["dfc"]["b"],
                        32 * s * s, act="relu").reshape(n, s, s, 32)
    d = deconv2x_nhwc(d, gparams["dc1"], cout=16, act="relu")
    recon = deconv2x_nhwc(d, gparams["dc2"], cout=3, act="sigmoid")

    # TODO(synk): ConvEncoder/ConvDecoder/Discriminator sources were not provided; a standard
    # small conv-AAE architecture is assumed (discriminator is not used by forward()).
    return jnp.transpose(recon, (0, 3, 1, 2)), z            # NHWC -> NCHW once at the boundary


if __name__ == "__main__":
    latent_dim = 32
    image_size = 16
    batch = 2

    key = jax.random.PRNGKey(0)
    k_params, k_x = jax.random.split(key)
    params = init_params(k_params, latent_dim, image_size)
    gparams = prepare_gemm_params(params, image_size)        # one-time weight repack (bf16, padded)
    x = jax.random.uniform(k_x, (batch, 3, image_size, image_size), jnp.float32)

    fwd = jax.jit(generic_aae_forward, static_argnums=(2, 3))
    recon, z = fwd(gparams, x, latent_dim, image_size)
    recon = jax.block_until_ready(recon)
    z = jax.block_until_ready(z)

    assert recon.shape == (batch, 3, image_size, image_size)
    assert z.shape == (batch, latent_dim)
    assert bool(jnp.all(jnp.isfinite(recon))) and bool(jnp.all(jnp.isfinite(z)))
    assert bool(jnp.all((recon >= 0.0) & (recon <= 1.0)))    # sigmoid output

    print("KERNEL_OK")
</pallas_src>

<mosaic_0001>
module attributes {stable_mosaic.version = 11 : i64} {
  func.func @_mm_bias_act_kernel(%arg0: i32, %arg1: memref<128x128xbf16, #tpu.memory_space<vmem>>, %arg2: memref<128x128xbf16, #tpu.memory_space<vmem>>, %arg3: memref<1x128xf32, #tpu.memory_space<vmem>>, %arg4: memref<128x128xf32, #tpu.memory_space<vmem>>) attributes {dimension_semantics = [#tpu.dimension_semantics<parallel>], iteration_bounds = array<i64: 1>, scalar_prefetch = 0 : i64, scratch_operands = 0 : i64, tpu.core_type = #tpu.core_type<tc>, window_params = [{transform_indices = @transform_0, window_bounds = array<i64: 128, 128>}, {pipeline_mode = #tpu.pipeline_mode<synchronous>, transform_indices = @transform_1, window_bounds = array<i64: 128, 128>}, {pipeline_mode = #tpu.pipeline_mode<synchronous>, transform_indices = @transform_2, window_bounds = array<i64: 1, 128>}, {transform_indices = @transform_3, window_bounds = array<i64: 128, 128>}]} {
    %c0 = arith.constant 0 : index
    %c0_0 = arith.constant 0 : index
    %0 = vector.load %arg1[%c0, %c0_0] : memref<128x128xbf16, #tpu.memory_space<vmem>>, vector<128x128xbf16>
    %c0_1 = arith.constant 0 : index
    %c0_2 = arith.constant 0 : index
    %1 = vector.load %arg2[%c0_1, %c0_2] : memref<128x128xbf16, #tpu.memory_space<vmem>>, vector<128x128xbf16>
    %cst = arith.constant dense<0.000000e+00> : vector<128x128xf32>
    %2 = tpu.matmul %0, %1, %cst {dimension_numbers = #tpu.dot_dimension_numbers<[1], [0], [0], [1], [0, 0, 1, 1], [], []>} : vector<128x128xbf16>, vector<128x128xbf16>, vector<128x128xf32> -> vector<128x128xf32>
    %c0_3 = arith.constant 0 : index
    %c0_4 = arith.constant 0 : index
    %3 = vector.load %arg3[%c0_3, %c0_4] : memref<1x128xf32, #tpu.memory_space<vmem>>, vector<1x128xf32>
    %4 = vector.broadcast %3 : vector<1x128xf32> to vector<128x128xf32>
    %5 = arith.addf %2, %4 : vector<128x128xf32>
    %cst_5 = arith.constant 0.000000e+00 : f32
    %6 = vector.broadcast %cst_5 : f32 to vector<128x128xf32>
    %7 = arith.maximumf %5, %6 : vector<128x128xf32>
    %c0_6 = arith.constant 0 : index
    %c0_7 = arith.constant 0 : index
    %8 = vector.load %arg4[%c0_6, %c0_7] : memref<128x128xf32, #tpu.memory_space<vmem>>, vector<128x128xf32>
    tpu.vector_store %arg4[%c0_6, %c0_7], %7 {strides = array<i32>} : memref<128x128xf32, #tpu.memory_space<vmem>>, vector<128x128xf32>,
    return
  }
  func.func @transform_0(%arg0: i32) -> (i32, i32) {
    %c0_i32 = arith.constant 0 : i32
    %c0_i32_0 = arith.constant 0 : i32
    return %arg0, %c0_i32 : i32, i32
  }
  func.func @transform_1(%arg0: i32) -> (i32, i32) {
    %c0_i32 = arith.constant 0 : i32
    %c0_i32_0 = arith.constant 0 : i32
    %c0_i32_1 = arith.constant 0 : i32
    return %c0_i32, %c0_i32_0 : i32, i32
  }
  func.func @transform_2(%arg0: i32) -> (i32, i32) {
    %c0_i32 = arith.constant 0 : i32
    %c0_i32_0 = arith.constant 0 : i32
    %c0_i32_1 = arith.constant 0 : i32
    return %c0_i32, %c0_i32_0 : i32, i32
  }
  func.func @transform_3(%arg0: i32) -> (i32, i32) {
    %c0_i32 = arith.constant 0 : i32
    %c0_i32_0 = arith.constant 0 : i32
    return %arg0, %c0_i32 : i32, i32
  }
}

module attributes {stable_mosaic.version = 11 : i64} {
  func.func @_mm_bias_act_kernel(%arg0: i32, %arg1: memref<16x512xbf16, #tpu.memory_space<vmem>>, %arg2: memref<512x128xbf16, #tpu.memory_space<vmem>>, %arg3: memref<1x128xf32, #tpu.memory_space<vmem>>, %arg4: memref<16x128xf32, #tpu.memory_space<vmem>>) attributes {dimension_semantics = [#tpu.dimension_semantics<parallel>], iteration_bounds = array<i64: 1>, scalar_prefetch = 0 : i64, scratch_operands = 0 : i64, tpu.core_type = #tpu.core_type<tc>, window_params = [{transform_indices = @transform_0, window_bounds = array<i64: 16, 512>}, {pipeline_mode = #tpu.pipeline_mode<synchronous>, transform_indices = @transform_1, window_bounds = array<i64: 512, 128>}, {pipeline_mode = #tpu.pipeline_mode<synchronous>, transform_indices = @transform_2, window_bounds = array<i64: 1, 128>}, {transform_indices = @transform_3, window_bounds = array<i64: 16, 128>}]} {
    %c0 = arith.constant 0 : index
    %c0_0 = arith.constant 0 : index
    %0 = vector.load %arg1[%c0, %c0_0] : memref<16x512xbf16, #tpu.memory_space<vmem>>, vector<16x512xbf16>
    %c0_1 = arith.constant 0 : index
    %c0_2 = arith.constant 0 : index
    %1 = vector.load %arg2[%c0_1, %c0_2] : memref<512x128xbf16, #tpu.memory_space<vmem>>, vector<512x128xbf16>
    %cst = arith.constant dense<0.000000e+00> : vector<16x128xf32>
    %2 = tpu.matmul %0, %1, %cst {dimension_numbers = #tpu.dot_dimension_numbers<[1], [0], [0], [1], [0, 0, 1, 1], [], []>} : vector<16x512xbf16>, vector<512x128xbf16>, vector<16x128xf32> -> vector<16x128xf32>
    %c0_3 = arith.constant 0 : index
    %c0_4 = arith.constant 0 : index
    %3 = vector.load %arg3[%c0_3, %c0_4] : memref<1x128xf32, #tpu.memory_space<vmem>>, vector<1x128xf32>
    %4 = vector.broadcast %3 : vector<1x128xf32> to vector<16x128xf32>
    %5 = arith.addf %2, %4 : vector<16x128xf32>
    %c0_5 = arith.constant 0 : index
    %c0_6 = arith.constant 0 : index
    %6 = vector.load %arg4[%c0_5, %c0_6] : memref<16x128xf32, #tpu.memory_space<vmem>>, vector<16x128xf32>
    tpu.vector_store %arg4[%c0_5, %c0_6], %5 {strides = array<i32>} : memref<16x128xf32, #tpu.memory_space<vmem>>, vector<16x128xf32>,
    return
  }
  func.func @transform_0(%arg0: i32) -> (i32, i32) {
    %c0_i32 = arith.constant 0 : i32
    %c0_i32_0 = arith.constant 0 : i32
    return %arg0, %c0_i32 : i32, i32
  }
  func.func @transform_1(%arg0: i32) -> (i32, i32) {
    %c0_i32 = arith.constant 0 : i32
    %c0_i32_0 = arith.constant 0 : i32
    %c0_i32_1 = arith.constant 0 : i32
    return %c0_i32, %c0_i32_0 : i32, i32
  }
  func.func @transform_2(%arg0: i32) -> (i32, i32) {
    %c0_i32 = arith.constant 0 : i32
    %c0_i32_0 = arith.constant 0 : i32
    %c0_i32_1 = arith.constant 0 : i32
    return %c0_i32, %c0_i32_0 : i32, i32
  }
  func.func @transform_3(%arg0: i32) -> (i32, i32) {
    %c0_i32 = arith.constant 0 : i32
    %c0_i32_0 = arith.constant 0 : i32
    return %arg0, %c0_i32 : i32, i32
  }
}

module attributes {stable_mosaic.version = 11 : i64} {
  func.func @_mm_bias_act_kernel(%arg0: i32, %arg1: memref<32x256xbf16, #tpu.memory_space<vmem>>, %arg2: memref<256x128xbf16, #tpu.memory_space<vmem>>, %arg3: memref<1x128xf32, #tpu.memory_space<vmem>>, %arg4: memref<32x128xf32, #tpu.memory_space<vmem>>) attributes {dimension_semantics = [#tpu.dimension_semantics<parallel>], iteration_bounds = array<i64: 1>, scalar_prefetch = 0 : i64, scratch_operands = 0 : i64, tpu.core_type = #tpu.core_type<tc>, window_params = [{transform_indices = @transform_0, window_bounds = array<i64: 32, 256>}, {pipeline_mode = #tpu.pipeline_mode<synchronous>, transform_indices = @transform_1, window_bounds = array<i64: 256, 128>}, {pipeline_mode = #tpu.pipeline_mode<synchronous>, transform_indices = @transform_2, window_bounds = array<i64: 1, 128>}, {transform_indices = @transform_3, window_bounds = array<i64: 32, 128>}]} {
    %c0 = arith.constant 0 : index
    %c0_0 = arith.constant 0 : index
    %0 = vector.load %arg1[%c0, %c0_0] : memref<32x256xbf16, #tpu.memory_space<vmem>>, vector<32x256xbf16>
    %c0_1 = arith.constant 0 : index
    %c0_2 = arith.constant 0 : index
    %1 = vector.load %arg2[%c0_1, %c0_2] : memref<256x128xbf16, #tpu.memory_space<vmem>>, vector<256x128xbf16>
    %cst = arith.constant dense<0.000000e+00> : vector<32x128xf32>
    %2 = tpu.matmul %0, %1, %cst {dimension_numbers = #tpu.dot_dimension_numbers<[1], [0], [0], [1], [0, 0, 1, 1], [], []>} : vector<32x256xbf16>, vector<256x128xbf16>, vector<32x128xf32> -> vector<32x128xf32>
    %c0_3 = arith.constant 0 : index
    %c0_4 = arith.constant 0 : index
    %3 = vector.load %arg3[%c0_3, %c0_4] : memref<1x128xf32, #tpu.memory_space<vmem>>, vector<1x128xf32>
    %4 = vector.broadcast %3 : vector<1x128xf32> to vector<32x128xf32>
    %5 = arith.addf %2, %4 : vector<32x128xf32>
    %cst_5 = arith.constant 0.000000e+00 : f32
    %6 = vector.broadcast %cst_5 : f32 to vector<32x128xf32>
    %7 = arith.maximumf %5, %6 : vector<32x128xf32>
    %c0_6 = arith.constant 0 : index
    %c0_7 = arith.constant 0 : index
    %8 = vector.load %arg4[%c0_6, %c0_7] : memref<32x128xf32, #tpu.memory_space<vmem>>, vector<32x128xf32>
    tpu.vector_store %arg4[%c0_6, %c0_7], %7 {strides = array<i32>} : memref<32x128xf32, #tpu.memory_space<vmem>>, vector<32x128xf32>,
    return
  }
  func.func @transform_0(%arg0: i32) -> (i32, i32) {
    %c0_i32 = arith.constant 0 : i32
    %c0_i32_0 = arith.constant 0 : i32
    return %arg0, %c0_i32 : i32, i32
  }
  func.func @transform_1(%arg0: i32) -> (i32, i32) {
    %c0_i32 = arith.constant 0 : i32
    %c0_i32_0 = arith.constant 0 : i32
    %c0_i32_1 = arith.constant 0 : i32
    return %c0_i32, %c0_i32_0 : i32, i32
  }
  func.func @transform_2(%arg0: i32) -> (i32, i32) {
    %c0_i32 = arith.constant 0 : i32
    %c0_i32_0 = arith.constant 0 : i32
    %c0_i32_1 = arith.constant 0 : i32
    return %c0_i32, %c0_i32_0 : i32, i32
  }
  func.func @transform_3(%arg0: i32) -> (i32, i32) {
    %c0_i32 = arith.constant 0 : i32
    %c0_i32_0 = arith.constant 0 : i32
    return %arg0, %c0_i32 : i32, i32
  }
}

module attributes {stable_mosaic.version = 11 : i64} {
  func.func @_mm_bias_act_kernel(%arg0: i32, %arg1: memref<16x128xbf16, #tpu.memory_space<vmem>>, %arg2: memref<128x512xbf16, #tpu.memory_space<vmem>>, %arg3: memref<1x512xf32, #tpu.memory_space<vmem>>, %arg4: memref<16x512xf32, #tpu.memory_space<vmem>>) attributes {dimension_semantics = [#tpu.dimension_semantics<parallel>], iteration_bounds = array<i64: 1>, scalar_prefetch = 0 : i64, scratch_operands = 0 : i64, tpu.core_type = #tpu.core_type<tc>, window_params = [{transform_indices = @transform_0, window_bounds = array<i64: 16, 128>}, {pipeline_mode = #tpu.pipeline_mode<synchronous>, transform_indices = @transform_1, window_bounds = array<i64: 128, 512>}, {pipeline_mode = #tpu.pipeline_mode<synchronous>, transform_indices = @transform_2, window_bounds = array<i64: 1, 512>}, {transform_indices = @transform_3, window_bounds = array<i64: 16, 512>}]} {
    %c0 = arith.constant 0 : index
    %c0_0 = arith.constant 0 : index
    %0 = vector.load %arg1[%c0, %c0_0] : memref<16x128xbf16, #tpu.memory_space<vmem>>, vector<16x128xbf16>
    %c0_1 = arith.constant 0 : index
    %c0_2 = arith.constant 0 : index
    %1 = vector.load %arg2[%c0_1, %c0_2] : memref<128x512xbf16, #tpu.memory_space<vmem>>, vector<128x512xbf16>
    %cst = arith.constant dense<0.000000e+00> : vector<16x512xf32>
    %2 = tpu.matmul %0, %1, %cst {dimension_numbers = #tpu.dot_dimension_numbers<[1], [0], [0], [1], [0, 0, 1, 1], [], []>} : vector<16x128xbf16>, vector<128x512xbf16>, vector<16x512xf32> -> vector<16x512xf32>
    %c0_3 = arith.constant 0 : index
    %c0_4 = arith.constant 0 : index
    %3 = vector.load %arg3[%c0_3, %c0_4] : memref<1x512xf32, #tpu.memory_space<vmem>>, vector<1x512xf32>
    %4 = vector.broadcast %3 : vector<1x512xf32> to vector<16x512xf32>
    %5 = arith.addf %2, %4 : vector<16x512xf32>
    %cst_5 = arith.constant 0.000000e+00 : f32
    %6 = vector.broadcast %cst_5 : f32 to vector<16x512xf32>
    %7 = arith.maximumf %5, %6 : vector<16x512xf32>
    %c0_6 = arith.constant 0 : index
    %c0_7 = arith.constant 0 : index
    %8 = vector.load %arg4[%c0_6, %c0_7] : memref<16x512xf32, #tpu.memory_space<vmem>>, vector<16x512xf32>
    tpu.vector_store %arg4[%c0_6, %c0_7], %7 {strides = array<i32>} : memref<16x512xf32, #tpu.memory_space<vmem>>, vector<16x512xf32>,
    return
  }
  func.func @transform_0(%arg0: i32) -> (i32, i32) {
    %c0_i32 = arith.constant 0 : i32
    %c0_i32_0 = arith.constant 0 : i32
    return %arg0, %c0_i32 : i32, i32
  }
  func.func @transform_1(%arg0: i32) -> (i32, i32) {
    %c0_i32 = arith.constant 0 : i32
    %c0_i32_0 = arith.constant 0 : i32
    %c0_i32_1 = arith.constant 0 : i32
    return %c0_i32, %c0_i32_0 : i32, i32
  }
  func.func @transform_2(%arg0: i32) -> (i32, i32) {
    %c0_i32 = arith.constant 0 : i32
    %c0_i32_0 = arith.constant 0 : i32
    %c0_i32_1 = arith.constant 0 : i32
    return %c0_i32, %c0_i32_0 : i32, i32
  }
  func.func @transform_3(%arg0: i32) -> (i32, i32) {
    %c0_i32 = arith.constant 0 : i32
    %c0_i32_0 = arith.constant 0 : i32
    return %arg0, %c0_i32 : i32, i32
  }
}

module attributes {stable_mosaic.version = 11 : i64} {
  func.func @_mm_bias_act_kernel(%arg0: i32, %arg1: memref<32x384xbf16, #tpu.memory_space<vmem>>, %arg2: memref<384x128xbf16, #tpu.memory_space<vmem>>, %arg3: memref<1x128xf32, #tpu.memory_space<vmem>>, %arg4: memref<32x128xf32, #tpu.memory_space<vmem>>) attributes {dimension_semantics = [#tpu.dimension_semantics<parallel>], iteration_bounds = array<i64: 1>, scalar_prefetch = 0 : i64, scratch_operands = 0 : i64, tpu.core_type = #tpu.core_type<tc>, window_params = [{transform_indices = @transform_0, window_bounds = array<i64: 32, 384>}, {pipeline_mode = #tpu.pipeline_mode<synchronous>, transform_indices = @transform_1, window_bounds = array<i64: 384, 128>}, {pipeline_mode = #tpu.pipeline_mode<synchronous>, transform_indices = @transform_2, window_bounds = array<i64: 1, 128>}, {transform_indices = @transform_3, window_bounds = array<i64: 32, 128>}]} {
    %c0 = arith.constant 0 : index
    %c0_0 = arith.constant 0 : index
    %0 = vector.load %arg1[%c0, %c0_0] : memref<32x384xbf16, #tpu.memory_space<vmem>>, vector<32x384xbf16>
    %c0_1 = arith.constant 0 : index
    %c0_2 = arith.constant 0 : index
    %1 = vector.load %arg2[%c0_1, %c0_2] : memref<384x128xbf16, #tpu.memory_space<vmem>>, vector<384x128xbf16>
    %cst = arith.constant dense<0.000000e+00> : vector<32x128xf32>
    %2 = tpu.matmul %0, %1, %cst {dimension_numbers = #tpu.dot_dimension_numbers<[1], [0], [0], [1], [0, 0, 1, 1], [], []>} : vector<32x384xbf16>, vector<384x128xbf16>, vector<32x128xf32> -> vector<32x128xf32>
    %c0_3 = arith.constant 0 : index
    %c0_4 = arith.constant 0 : index
    %3 = vector.load %arg3[%c0_3, %c0_4] : memref<1x128xf32, #tpu.memory_space<vmem>>, vector<1x128xf32>
    %4 = vector.broadcast %3 : vector<1x128xf32> to vector<32x128xf32>
    %5 = arith.addf %2, %4 : vector<32x128xf32>
    %cst_5 = arith.constant 0.000000e+00 : f32
    %6 = vector.broadcast %cst_5 : f32 to vector<32x128xf32>
    %7 = arith.maximumf %5, %6 : vector<32x128xf32>
    %c0_6 = arith.constant 0 : index
    %c0_7 = arith.constant 0 : index
    %8 = vector.load %arg4[%c0_6, %c0_7] : memref<32x128xf32, #tpu.memory_space<vmem>>, vector<32x128xf32>
    tpu.vector_store %arg4[%c0_6, %c0_7], %7 {strides = array<i32>} : memref<32x128xf32, #tpu.memory_space<vmem>>, vector<32x128xf32>,
    return
  }
  func.func @transform_0(%arg0: i32) -> (i32, i32) {
    %c0_i32 = arith.constant 0 : i32
    %c0_i32_0 = arith.constant 0 : i32
    return %arg0, %c0_i32 : i32, i32
  }
  func.func @transform_1(%arg0: i32) -> (i32, i32) {
    %c0_i32 = arith.constant 0 : i32
    %c0_i32_0 = arith.constant 0 : i32
    %c0_i32_1 = arith.constant 0 : i32
    return %c0_i32, %c0_i32_0 : i32, i32
  }
  func.func @transform_2(%arg0: i32) -> (i32, i32) {
    %c0_i32 = arith.constant 0 : i32
    %c0_i32_0 = arith.constant 0 : i32
    %c0_i32_1 = arith.constant 0 : i32
    return %c0_i32, %c0_i32_0 : i32, i32
  }
  func.func @transform_3(%arg0: i32) -> (i32, i32) {
    %c0_i32 = arith.constant 0 : i32
    %c0_i32_0 = arith.constant 0 : i32
    return %arg0, %c0_i32 : i32, i32
  }
}

module attributes {stable_mosaic.version = 11 : i64} {
  func.func @_mm_bias_act_kernel(%arg0: i32, %arg1: memref<128x256xbf16, #tpu.memory_space<vmem>>, %arg2: memref<256x128xbf16, #tpu.memory_space<vmem>>, %arg3: memref<1x128xf32, #tpu.memory_space<vmem>>, %arg4: memref<128x128xf32, #tpu.memory_space<vmem>>) attributes {dimension_semantics = [#tpu.dimension_semantics<parallel>], iteration_bounds = array<i64: 1>, scalar_prefetch = 0 : i64, scratch_operands = 0 : i64, tpu.core_type = #tpu.core_type<tc>, window_params = [{transform_indices = @transform_0, window_bounds = array<i64: 128, 256>}, {pipeline_mode = #tpu.pipeline_mode<synchronous>, transform_indices = @transform_1, window_bounds = array<i64: 256, 128>}, {pipeline_mode = #tpu.pipeline_mode<synchronous>, transform_indices = @transform_2, window_bounds = array<i64: 1, 128>}, {transform_indices = @transform_3, window_bounds = array<i64: 128, 128>}]} {
    %c0 = arith.constant 0 : index
    %c0_0 = arith.constant 0 : index
    %0 = vector.load %arg1[%c0, %c0_0] : memref<128x256xbf16, #tpu.memory_space<vmem>>, vector<128x256xbf16>
    %c0_1 = arith.constant 0 : index
    %c0_2 = arith.constant 0 : index
    %1 = vector.load %arg2[%c0_1, %c0_2] : memref<256x128xbf16, #tpu.memory_space<vmem>>, vector<256x128xbf16>
    %cst = arith.constant dense<0.000000e+00> : vector<128x128xf32>
    %2 = tpu.matmul %0, %1, %cst {dimension_numbers = #tpu.dot_dimension_numbers<[1], [0], [0], [1], [0, 0, 1, 1], [], []>} : vector<128x256xbf16>, vector<256x128xbf16>, vector<128x128xf32> -> vector<128x128xf32>
    %c0_3 = arith.constant 0 : index
    %c0_4 = arith.constant 0 : index
    %3 = vector.load %arg3[%c0_3, %c0_4] : memref<1x128xf32, #tpu.memory_space<vmem>>, vector<1x128xf32>
    %4 = vector.broadcast %3 : vector<1x128xf32> to vector<128x128xf32>
    %5 = arith.addf %2, %4 : vector<128x128xf32>
    %cst_5 = arith.constant 0.000000e+00 : f32
    %6 = vector.broadcast %cst_5 : f32 to vector<128x128xf32>
    %7 = arith.subf %6, %5 : vector<128x128xf32>
    %8 = math.exp %7 : vector<128x128xf32>
    %cst_6 = arith.constant 1.000000e+00 : f32
    %9 = vector.broadcast %cst_6 : f32 to vector<128x128xf32>
    %10 = arith.addf %9, %8 : vector<128x128xf32>
    %cst_7 = arith.constant 1.000000e+00 : f32
    %11 = vector.broadcast %cst_7 : f32 to vector<128x128xf32>
    %12 = arith.divf %11, %10 : vector<128x128xf32>
    %c0_8 = arith.constant 0 : index
    %c0_9 = arith.constant 0 : index
    %13 = vector.load %arg4[%c0_8, %c0_9] : memref<128x128xf32, #tpu.memory_space<vmem>>, vector<128x128xf32>
    tpu.vector_store %arg4[%c0_8, %c0_9], %12 {strides = array<i32>} : memref<128x128xf32, #tpu.memory_space<vmem>>, vector<128x128xf32>,
    return
  }
  func.func @transform_0(%arg0: i32) -> (i32, i32) {
    %c0_i32 = arith.constant 0 : i32
    %c0_i32_0 = arith.constant 0 : i32
    return %arg0, %c0_i32 : i32, i32
  }
  func.func @transform_1(%arg0: i32) -> (i32, i32) {
    %c0_i32 = arith.constant 0 : i32
    %c0_i32_0 = arith.constant 0 : i32
    %c0_i32_1 = arith.constant 0 : i32
    return %c0_i32, %c0_i32_0 : i32, i32
  }
  func.func @transform_2(%arg0: i32) -> (i32, i32) {
    %c0_i32 = arith.constant 0 : i32
    %c0_i32_0 = arith.constant 0 : i32
    %c0_i32_1 = arith.constant 0 : i32
    return %c0_i32, %c0_i32_0 : i32, i32
  }
  func.func @transform_3(%arg0: i32) -> (i32, i32) {
    %c0_i32 = arith.constant 0 : i32
    %c0_i32_0 = arith.constant 0 : i32
    return %arg0, %c0_i32 : i32, i32
  }
}

</mosaic_0001>

<bundles_post_ra>
// kernel: generic_aae_forward.6
= control target key start
LH: loop header
LB: loop body
LE: loop exit
PB: predicated region body
PF: predicated region fallthrough
CT: control target
= control target key end

     0   :  { %s499_s1 = inlined_call_operand.vmem [shape: bf16[128,128], index: 1, kind: input, shape index: {}]   ;;  %s500_s0 = inlined_call_operand.vmem [shape: bf16[128,128], index: 0, kind: input, shape index: {}]   ;;  %s501_s2 = inlined_call_operand.vmem [shape: f32[1,128], index: 2, kind: input, shape index: {}]   ;;  %s502_s3 = inlined_call_operand.vmem [shape: f32[128,128], index: 3, kind: output, shape index: {}]  }
   0x1   :  { %v364_v0 = vld [vmem:[%s499_s1 + $0x38] sm:$0xff]   ;;  %v365_v1 = vld [vmem:[%s499_s1 + $0x30] sm:$0xff]   ;;  %v366_v2 = vld [vmem:[%s499_s1 + $0x28] sm:$0xff]  }
   0x2   :  { %316 = vmatprep.subr.bf16.mxu0 %v364_v0  ;;  %348 = vmatprep.subr.bf16.mxu1 %v364_v0  ;;  %v367_v3 = vld [vmem:[%s499_s1 + $0x20] sm:$0xff]   ;;  %v368_v6 = vld [vmem:[%s499_s1 + $0x18] sm:$0xff]   ;;  %v369_v7 = vld [vmem:[%s499_s1 + $0x10] sm:$0xff]  }
   0x3   :  { %317 = vmatpush3.bf16.msra.mxu0 %v364_v0  ;;  %356 = vmatpush3.bf16.msra.mxu1 %v364_v0  ;;  %v372_v4 = vld [vmem:[%s500_s0] sm:$0xff]   ;;  %v370_v8 = vld [vmem:[%s499_s1 + $0x8] sm:$0xff]   ;;  %v376_v12 = vld [vmem:[%s500_s0 + $0x10] sm:$0xff]  }
   0x4   :  { %318 = vmatprep.subr.bf16.mxu0 %v365_v1  ;;  %349 = vmatprep.subr.bf16.mxu1 %v365_v1  ;;  %v373_v5 = vld [vmem:[%s500_s0 + $0x20] sm:$0xff]   ;;  %v374_v10 = vld [vmem:[%s500_s0 + $0x8] sm:$0xff]   ;;  %v377_v13 = vld [vmem:[%s500_s0 + $0x30] sm:$0xff]  }
   0x5   :  { %332 = vmatprep.mubr.bf16.mxu0 %v372_v4  ;;  %340 = vmatprep.mubr.bf16.mxu1 %v373_v5  ;;  %v371_v9 = vld [vmem:[%s499_s1] sm:$0xff]   ;;  %v375_v11 = vld [vmem:[%s500_s0 + $0x28] sm:$0xff]   ;;  %v378_v14 = vld [vmem:[%s500_s0 + $0x18] sm:$0xff]  }
   0x6   :  { %v379_v15 = vld [vmem:[%s500_s0 + $0x38] sm:$0xff]   ;;  %v283_v16 = vld [vmem:[%s501_s2] ss:$0 sm:$0xff] }
   0x7   :  { %319 = vmatpush3.bf16.msra.mxu0 %v365_v1  ;;  %357 = vmatpush3.bf16.msra.mxu1 %v365_v1 }
   0x8   :  { %320 = vmatprep.subr.bf16.mxu0 %v366_v2  ;;  %350 = vmatprep.subr.bf16.mxu1 %v366_v2 }
   0xb   :  { %321 = vmatpush3.bf16.msra.mxu0 %v366_v2  ;;  %358 = vmatpush3.bf16.msra.mxu1 %v366_v2 }
   0xc   :  { %322 = vmatprep.subr.bf16.mxu0 %v367_v3  ;;  %351 = vmatprep.subr.bf16.mxu1 %v367_v3 }
   0xf   :  { %323 = vmatpush3.bf16.msra.mxu0 %v367_v3  ;;  %359 = vmatpush3.bf16.msra.mxu1 %v367_v3 }
  0x10   :  { %324 = vmatprep.subr.bf16.mxu0 %v368_v6  ;;  %352 = vmatprep.subr.bf16.mxu1 %v368_v6 }
  0x13   :  { %325 = vmatpush3.bf16.msra.mxu0 %v368_v6  ;;  %360 = vmatpush3.bf16.msra.mxu1 %v368_v6 }
  0x14   :  { %326 = vmatprep.subr.bf16.mxu0 %v369_v7  ;;  %353 = vmatprep.subr.bf16.mxu1 %v369_v7 }
  0x17   :  { %327 = vmatpush3.bf16.msra.mxu0 %v369_v7  ;;  %361 = vmatpush3.bf16.msra.mxu1 %v369_v7 }
  0x18   :  { %328 = vmatprep.subr.bf16.mxu0 %v370_v8  ;;  %354 = vmatprep.subr.bf16.mxu1 %v370_v8 }
  0x1b   :  { %329 = vmatpush3.bf16.msra.mxu0 %v370_v8  ;;  %362 = vmatpush3.bf16.msra.mxu1 %v370_v8 }
  0x1c   :  { %330 = vmatprep.subr.bf16.mxu0 %v371_v9  ;;  %355 = vmatprep.subr.bf16.mxu1 %v371_v9 }
  0x1f   :  { %331 = vmatpush3.bf16.msra.mxu0 %v371_v9  ;;  %363 = vmatpush3.bf16.msra.mxu1 %v371_v9 }
  0x22   :  { %333 = vmatmul.mubr.bf16.vlgmr.msra.gmra.mxu0 %v374_v10  ;;  %341 = vmatmul.mubr.bf16.vlgmr.msra.gmra.mxu1 %v375_v11 }
  0x23   :  { %336 = vmatprep.mubr.bf16.mxu0 %v376_v12  ;;  %344 = vmatprep.mubr.bf16.mxu1 %v377_v13 }
  0x2a   :  { %337 = vmatmul.mubr.bf16.gmra.mxu0 %v378_v14  ;;  %345 = vmatmul.mubr.bf16.gmra.mxu1 %v379_v15 }
  0xe2   :  { %v334_v17 = vpop.f32.mrf.mxu0  ;;  %v342_v18 = vpop.f32.mrf.mxu1 }
  0xe3   :  { %v193_v19 = vadd.f32 %v334_v17, %v283_v16  ;;  %v225_v20 = vadd.f32 %v342_v18, %v283_v16 }
  0xe4   :  { %v184_v21 = vpop.f32.mrf.mxu0  ;;  %v216_v22 = vpop.f32.mrf.mxu1 }
  0xe5   :  { %v249_v23 = vmax.f32 %v193_v19, 0.0  ;;  %v257_v24 = vmax.f32 %v225_v20, 0.0  ;;  %v185_v25 = vadd.f32 %v283_v16, %v184_v21  ;;  %v217_v26 = vadd.f32 %v283_v16, %v216_v22 }
  0xe6   :  { %v335_v27 = vpop.f32.mrf.mxu0  ;;  %v343_v28 = vpop.f32.mrf.mxu1 }
  0xe7   :  { %265 = vst [vmem:[%s502_s3 + $0x10] sm:$0xff] %v249_v23  ;;  %273 = vst [vmem:[%s502_s3 + $0x50] sm:$0xff] %v257_v24  ;;  %v247_v29 = vmax.f32 %v185_v25, 0.0  ;;  %v255_v30 = vmax.f32 %v217_v26, 0.0  ;;  %v196_v31 = vadd.f32 %v335_v27, %v283_v16  ;;  %v228_v32 = vadd.f32 %v343_v28, %v283_v16 }
  0xe8   :  { %v187_v33 = vpop.f32.mrf.mxu0  ;;  %v219_v34 = vpop.f32.mrf.mxu1 }
  0xe9   :  { %263 = vst [vmem:[%s502_s3] sm:$0xff] %v247_v29  ;;  %271 = vst [vmem:[%s502_s3 + $0x40] sm:$0xff] %v255_v30  ;;  %v250_v35 = vmax.f32 %v196_v31, 0.0  ;;  %v258_v36 = vmax.f32 %v228_v32, 0.0  ;;  %v188_v37 = vadd.f32 %v283_v16, %v187_v33  ;;  %v220_v38 = vadd.f32 %v283_v16, %v219_v34 }
  0xea   :  { %v338_v39 = vpop.f32.mrf.mxu0  ;;  %v346_v40 = vpop.f32.mrf.mxu1 }
  0xeb   :  { %266 = vst [vmem:[%s502_s3 + $0x18] sm:$0xff] %v250_v35  ;;  %274 = vst [vmem:[%s502_s3 + $0x58] sm:$0xff] %v258_v36  ;;  %v248_v41 = vmax.f32 %v188_v37, 0.0  ;;  %v256_v42 = vmax.f32 %v220_v38, 0.0  ;;  %v209_v43 = vadd.f32 %v338_v39, %v283_v16  ;;  %v241_v44 = vadd.f32 %v346_v40, %v283_v16 }
  0xec   :  { %v200_v45 = vpop.f32.mrf.mxu0  ;;  %v232_v46 = vpop.f32.mrf.mxu1 }
  0xed   :  { %264 = vst [vmem:[%s502_s3 + $0x8] sm:$0xff] %v248_v41  ;;  %272 = vst [vmem:[%s502_s3 + $0x48] sm:$0xff] %v256_v42  ;;  %v253_v47 = vmax.f32 %v209_v43, 0.0  ;;  %v261_v48 = vmax.f32 %v241_v44, 0.0  ;;  %v201_v49 = vadd.f32 %v283_v16, %v200_v45  ;;  %v233_v50 = vadd.f32 %v283_v16, %v232_v46 }
  0xee   :  { %v339_v51 = vpop.f32.mrf.mxu0  ;;  %v347_v52 = vpop.f32.mrf.mxu1 }
  0xef   :  { %269 = vst [vmem:[%s502_s3 + $0x30] sm:$0xff] %v253_v47  ;;  %277 = vst [vmem:[%s502_s3 + $0x70] sm:$0xff] %v261_v48  ;;  %v251_v53 = vmax.f32 %v201_v49, 0.0  ;;  %v259_v54 = vmax.f32 %v233_v50, 0.0  ;;  %v212_v55 = vadd.f32 %v339_v51, %v283_v16  ;;  %v244_v56 = vadd.f32 %v347_v52, %v283_v16 }
  0xf0   :  { %v203_v57 = vpop.f32.mrf.mxu0  ;;  %v235_v58 = vpop.f32.mrf.mxu1 }
  0xf1   :  { %267 = vst [vmem:[%s502_s3 + $0x20] sm:$0xff] %v251_v53  ;;  %275 = vst [vmem:[%s502_s3 + $0x60] sm:$0xff] %v259_v54  ;;  %v254_v59 = vmax.f32 %v212_v55, 0.0  ;;  %v262_v60 = vmax.f32 %v244_v56, 0.0  ;;  %v204_v61 = vadd.f32 %v283_v16, %v203_v57  ;;  %v236_v62 = vadd.f32 %v283_v16, %v235_v58 }
  0xf3   :  { %270 = vst [vmem:[%s502_s3 + $0x38] sm:$0xff] %v254_v59  ;;  %278 = vst [vmem:[%s502_s3 + $0x78] sm:$0xff] %v262_v60  ;;  %v252_v63 = vmax.f32 %v204_v61, 0.0  ;;  %v260_v0 = vmax.f32 %v236_v62, 0.0 }
  0xf5   :  { %268 = vst [vmem:[%s502_s3 + $0x28] sm:$0xff] %v252_v63  ;;  %276 = vst [vmem:[%s502_s3 + $0x68] sm:$0xff] %v260_v0 }

// kernel: generic_aae_forward.7
= control target key start
LH: loop header
LB: loop body
LE: loop exit
PB: predicated region body
PF: predicated region fallthrough
CT: control target
= control target key end

     0   :  { %s417_s1 = inlined_call_operand.vmem [shape: bf16[256,128], index: 1, kind: input, shape index: {}]   ;;  %s418_s0 = inlined_call_operand.vmem [shape: bf16[32,256], index: 0, kind: input, shape index: {}]   ;;  %s419_s2 = inlined_call_operand.vmem [shape: f32[1,128], index: 2, kind: input, shape index: {}]   ;;  %s420_s3 = inlined_call_operand.vmem [shape: f32[32,128], index: 3, kind: output, shape index: {}]  }
   0x1   :  { %v300_v0 = vld [vmem:[%s417_s1 + $0x78] sm:$0xff]   ;;  %v302_v2 = vld [vmem:[%s417_s1 + $0x70] sm:$0xff]   ;;  %v304_v4 = vld [vmem:[%s417_s1 + $0x68] sm:$0xff]  }
   0x2   :  { %v301_v1 = vld [vmem:[%s417_s1 + $0x38] sm:$0xff]   ;;  %256 = vmatprep.subr.bf16.mxu0 %v300_v0  ;;  %284 = vmatprep.subr.bf16.mxu1 %v300_v0  ;;  %v303_v3 = vld [vmem:[%s417_s1 + $0x30] sm:$0xff]   ;;  %v305_v5 = vld [vmem:[%s417_s1 + $0x28] sm:$0xff]  }
   0x3   :  { %257 = vmatpush3.bf16.msra.mxu0 %v301_v1  ;;  %292 = vmatpush3.bf16.msra.mxu1 %v301_v1  ;;  %v306_v6 = vld [vmem:[%s417_s1 + $0x60] sm:$0xff]   ;;  %v308_v8 = vld [vmem:[%s417_s1 + $0x58] sm:$0xff]   ;;  %v310_v10 = vld [vmem:[%s417_s1 + $0x50] sm:$0xff]  }
   0x4   :  { %258 = vmatprep.subr.bf16.mxu0 %v302_v2  ;;  %285 = vmatprep.subr.bf16.mxu1 %v302_v2  ;;  %v307_v7 = vld [vmem:[%s417_s1 + $0x20] sm:$0xff]   ;;  %v309_v9 = vld [vmem:[%s417_s1 + $0x18] sm:$0xff]   ;;  %v311_v13 = vld [vmem:[%s417_s1 + $0x10] sm:$0xff]  }
   0x5   :  { %v318_v11 = vld [vmem:[%s418_s0 + $0x4] ss:$8 sps:$4 sm:$0xff]   ;;  %v321_v12 = vld [vmem:[%s418_s0 + $0x14] ss:$8 sps:$4 sm:$0xff]   ;;  %v316_v18 = vld [vmem:[%s418_s0] ss:$8 sps:$4 sm:$0xff]  }
   0x6   :  { %v312_v14 = vld [vmem:[%s417_s1 + $0x48] sm:$0xff]   ;;  %206 = vmatprep.mubr.bf16.mxu0 %v318_v11  ;;  %214 = vmatprep.mubr.bf16.mxu1 %v321_v12  ;;  %v314_v16 = vld [vmem:[%s417_s1 + $0x40] sm:$0xff]   ;;  %v319_v19 = vld [vmem:[%s418_s0 + $0x10] ss:$8 sps:$4 sm:$0xff]  }
   0x7   :  { %259 = vmatpush3.bf16.msra.mxu0 %v303_v3  ;;  %293 = vmatpush3.bf16.msra.mxu1 %v303_v3  ;;  %v313_v15 = vld [vmem:[%s417_s1 + $0x8] sm:$0xff]   ;;  %v315_v17 = vld [vmem:[%s417_s1] sm:$0xff]  }
   0x8   :  { %260 = vmatprep.subr.bf16.mxu0 %v304_v4  ;;  %286 = vmatprep.subr.bf16.mxu1 %v304_v4  ;;  %v235_v22 = vld [vmem:[%s419_s2] ss:$0 sm:$0xff] }
   0xb   :  { %261 = vmatpush3.bf16.msra.mxu0 %v305_v5  ;;  %294 = vmatpush3.bf16.msra.mxu1 %v305_v5 }
   0xc   :  { %262 = vmatprep.subr.bf16.mxu0 %v306_v6  ;;  %287 = vmatprep.subr.bf16.mxu1 %v306_v6 }
   0xf   :  { %263 = vmatpush3.bf16.msra.mxu0 %v307_v7  ;;  %295 = vmatpush3.bf16.msra.mxu1 %v307_v7 }
  0x10   :  { %264 = vmatprep.subr.bf16.mxu0 %v308_v8  ;;  %288 = vmatprep.subr.bf16.mxu1 %v308_v8 }
  0x13   :  { %265 = vmatpush3.bf16.msra.mxu0 %v309_v9  ;;  %296 = vmatpush3.bf16.msra.mxu1 %v309_v9 }
  0x14   :  { %266 = vmatprep.subr.bf16.mxu0 %v310_v10  ;;  %289 = vmatprep.subr.bf16.mxu1 %v310_v10 }
  0x17   :  { %267 = vmatpush3.bf16.msra.mxu0 %v311_v13  ;;  %297 = vmatpush3.bf16.msra.mxu1 %v311_v13 }
  0x18   :  { %268 = vmatprep.subr.bf16.mxu0 %v312_v14  ;;  %290 = vmatprep.subr.bf16.mxu1 %v312_v14 }
  0x1b   :  { %269 = vmatpush3.bf16.msra.mxu0 %v313_v15  ;;  %298 = vmatpush3.bf16.msra.mxu1 %v313_v15 }
  0x1c   :  { %270 = vmatprep.subr.bf16.mxu0 %v314_v16  ;;  %291 = vmatprep.subr.bf16.mxu1 %v314_v16 }
  0x1f   :  { %271 = vmatpush3.bf16.msra.mxu0 %v315_v17  ;;  %299 = vmatpush3.bf16.msra.mxu1 %v315_v17 }
  0x22   :  { %207 = vmatmul.mubr.bf16.vlgmr.msra.gmra.mxu0 %v316_v18  ;;  %215 = vmatmul.mubr.bf16.vlgmr.msra.gmra.mxu1 %v319_v19 }
  0xe2   :  { %v272_v20 = vpop.f32.mrf.mxu0  ;;  %v278_v21 = vpop.f32.mrf.mxu1 }
  0xe4   :  { %v273_v23 = vpop.f32.mrf.mxu0  ;;  %v279_v24 = vpop.f32.mrf.mxu1 }
  0xe5   :  { %v274_v25 = vadd.f32 %v273_v23, %v272_v20  ;;  %v280_v26 = vadd.f32 %v279_v24, %v278_v21 }
  0xe6   :  { %v275_v27 = vpop.f32.mrf.mxu0  ;;  %v281_v28 = vpop.f32.mrf.mxu1 }
  0xe7   :  { %v209_v29 = vadd.f32 %v274_v25, %v235_v22  ;;  %v217_v30 = vadd.f32 %v280_v26, %v235_v22 }
  0xe8   :  { %v276_v31 = vpop.f32.mrf.mxu0  ;;  %v282_v32 = vpop.f32.mrf.mxu1 }
  0xe9   :  { %v223_v33 = vmax.f32 %v209_v29, 0.0  ;;  %v225_v34 = vmax.f32 %v217_v30, 0.0  ;;  %v277_v35 = vadd.f32 %v276_v31, %v275_v27  ;;  %v283_v36 = vadd.f32 %v282_v32, %v281_v28 }
  0xeb   :  { %227 = vst [vmem:[%s420_s3] sm:$0xff] %v223_v33  ;;  %229 = vst [vmem:[%s420_s3 + $0x10] sm:$0xff] %v225_v34  ;;  %v212_v37 = vadd.f32 %v277_v35, %v235_v22  ;;  %v220_v38 = vadd.f32 %v283_v36, %v235_v22 }
  0xed   :  { %v224_v39 = vmax.f32 %v212_v37, 0.0  ;;  %v226_v40 = vmax.f32 %v220_v38, 0.0 }
  0xef   :  { %228 = vst [vmem:[%s420_s3 + $0x8] sm:$0xff] %v224_v39  ;;  %230 = vst [vmem:[%s420_s3 + $0x18] sm:$0xff] %v226_v40 }

// kernel: generic_aae_forward.8
= control target key start
LH: loop header
LB: loop body
LE: loop exit
PB: predicated region body
PF: predicated region fallthrough
CT: control target
= control target key end

     0   :  { %s646_s1 = inlined_call_operand.vmem [shape: bf16[512,128], index: 1, kind: input, shape index: {}]   ;;  %s647_s0 = inlined_call_operand.vmem [shape: bf16[16,512], index: 0, kind: input, shape index: {}]   ;;  %s648_s2 = inlined_call_operand.vmem [shape: f32[1,128], index: 2, kind: input, shape index: {}]   ;;  %s649_s3 = inlined_call_operand.vmem [shape: f32[16,128], index: 3, kind: output, shape index: {}]  }
   0x1   :  { %v471_v0 = vld [vmem:[%s646_s1 + $0x78] sm:$0xff]   ;;  %v475_v4 = vld [vmem:[%s646_s1 + $0x70] sm:$0xff]   ;;  %v479_v8 = vld [vmem:[%s646_s1 + $0x68] sm:$0xff]  }
   0x2   :  { %v472_v1 = vld [vmem:[%s646_s1 + $0xf8] sm:$0xff]   ;;  %427 = vmatprep.subr.bf16.mxu0 %v471_v0  ;;  %v476_v5 = vld [vmem:[%s646_s1 + $0xf0] sm:$0xff]   ;;  %v480_v9 = vld [vmem:[%s646_s1 + $0xe8] sm:$0xff]  }
   0x3   :  { %v473_v2 = vld [vmem:[%s646_s1 + $0x38] sm:$0xff]   ;;  %449 = vmatprep.subr.bf16.mxu1 %v472_v1  ;;  %v477_v6 = vld [vmem:[%s646_s1 + $0x30] sm:$0xff]   ;;  %v481_v10 = vld [vmem:[%s646_s1 + $0x28] sm:$0xff]  }
   0x4   :  { %v474_v3 = vld [vmem:[%s646_s1 + $0xb8] sm:$0xff]   ;;  %428 = vmatpush3.bf16.msra.mxu0 %v473_v2  ;;  %v478_v7 = vld [vmem:[%s646_s1 + $0xb0] sm:$0xff]   ;;  %v482_v11 = vld [vmem:[%s646_s1 + $0xa8] sm:$0xff]  }
   0x5   :  { %450 = vmatpush3.bf16.msra.mxu1 %v474_v3  ;;  %429 = vmatprep.subr.bf16.mxu0 %v475_v4  ;;  %v483_v12 = vld [vmem:[%s646_s1 + $0x60] sm:$0xff]   ;;  %v487_v16 = vld [vmem:[%s646_s1 + $0x58] sm:$0xff]   ;;  %v491_v20 = vld [vmem:[%s646_s1 + $0x50] sm:$0xff]  }
   0x6   :  { %451 = vmatprep.subr.bf16.mxu1 %v476_v5  ;;  %v484_v13 = vld [vmem:[%s646_s1 + $0xe0] sm:$0xff]   ;;  %v488_v17 = vld [vmem:[%s646_s1 + $0xd8] sm:$0xff]   ;;  %v492_v21 = vld [vmem:[%s646_s1 + $0xd0] sm:$0xff]  }
   0x7   :  { %v485_v14 = vld [vmem:[%s646_s1 + $0x20] sm:$0xff]   ;;  %v489_v18 = vld [vmem:[%s646_s1 + $0x18] sm:$0xff]   ;;  %v493_v22 = vld [vmem:[%s646_s1 + $0x10] sm:$0xff]  }
   0x8   :  { %430 = vmatpush3.bf16.msra.mxu0 %v477_v6  ;;  %v486_v15 = vld [vmem:[%s646_s1 + $0xa0] sm:$0xff]   ;;  %v490_v19 = vld [vmem:[%s646_s1 + $0x98] sm:$0xff]   ;;  %v494_v23 = vld [vmem:[%s646_s1 + $0x90] sm:$0xff]  }
   0x9   :  { %452 = vmatpush3.bf16.msra.mxu1 %v478_v7  ;;  %431 = vmatprep.subr.bf16.mxu0 %v479_v8  ;;  %v495_v24 = vld [vmem:[%s646_s1 + $0x48] sm:$0xff]   ;;  %v499_v28 = vld [vmem:[%s646_s1 + $0x40] sm:$0xff]  }
   0xa   :  { %453 = vmatprep.subr.bf16.mxu1 %v480_v9  ;;  %v496_v25 = vld [vmem:[%s646_s1 + $0xc8] sm:$0xff]   ;;  %v500_v29 = vld [vmem:[%s646_s1 + $0xc0] sm:$0xff]  }
   0xb   :  { %v497_v26 = vld [vmem:[%s646_s1 + $0x8] sm:$0xff]   ;;  %v501_v30 = vld [vmem:[%s646_s1] sm:$0xff]  }
   0xc   :  { %432 = vmatpush3.bf16.msra.mxu0 %v481_v10  ;;  %v498_v27 = vld [vmem:[%s646_s1 + $0x88] sm:$0xff]   ;;  %v502_v31 = vld [vmem:[%s646_s1 + $0x80] sm:$0xff]  }
   0xd   :  { %454 = vmatpush3.bf16.msra.mxu1 %v482_v11  ;;  %433 = vmatprep.subr.bf16.mxu0 %v483_v12  ;;  %v503_v32 = vld [vmem:[%s647_s0] ss:$16 sps:$4 sm:$0xff]   ;;  %v505_v33 = vld [vmem:[%s647_s0 + $0x4] ss:$16 sps:$4 sm:$0xff]   ;;  %v506_v34 = vld [vmem:[%s647_s0 + $0x8] ss:$16 sps:$4 sm:$0xff]  }
   0xe   :  { %455 = vmatprep.subr.bf16.mxu1 %v484_v13  ;;  %v508_v35 = vld [vmem:[%s647_s0 + $0xc] ss:$16 sps:$4 sm:$0xff]   ;;  %334 = vmatprep.mubr.bf16.mxu0 %v505_v33  ;;  %v390_v38 = vld [vmem:[%s648_s2] ss:$0 sm:$0xff] }
   0xf   :  { %375 = vmatprep.mubr.bf16.mxu1 %v508_v35 }
  0x10   :  { %434 = vmatpush3.bf16.msra.mxu0 %v485_v14 }
  0x11   :  { %456 = vmatpush3.bf16.msra.mxu1 %v486_v15  ;;  %435 = vmatprep.subr.bf16.mxu0 %v487_v16 }
  0x12   :  { %457 = vmatprep.subr.bf16.mxu1 %v488_v17 }
  0x14   :  { %436 = vmatpush3.bf16.msra.mxu0 %v489_v18 }
  0x15   :  { %458 = vmatpush3.bf16.msra.mxu1 %v490_v19  ;;  %437 = vmatprep.subr.bf16.mxu0 %v491_v20 }
  0x16   :  { %459 = vmatprep.subr.bf16.mxu1 %v492_v21 }
  0x18   :  { %438 = vmatpush3.bf16.msra.mxu0 %v493_v22 }
  0x19   :  { %460 = vmatpush3.bf16.msra.mxu1 %v494_v23  ;;  %439 = vmatprep.subr.bf16.mxu0 %v495_v24 }
  0x1a   :  { %461 = vmatprep.subr.bf16.mxu1 %v496_v25 }
  0x1c   :  { %440 = vmatpush3.bf16.msra.mxu0 %v497_v26 }
  0x1d   :  { %462 = vmatpush3.bf16.msra.mxu1 %v498_v27  ;;  %441 = vmatprep.subr.bf16.mxu0 %v499_v28 }
  0x1e   :  { %463 = vmatprep.subr.bf16.mxu1 %v500_v29 }
  0x20   :  { %442 = vmatpush3.bf16.msra.mxu0 %v501_v30 }
  0x21   :  { %464 = vmatpush3.bf16.msra.mxu1 %v502_v31 }
  0x23   :  { %335 = vmatmul.mubr.bf16.vlgmr.msra.gmra.mxu0 %v503_v32 }
  0x24   :  { %376 = vmatmul.mubr.bf16.vlgmr.msra.gmra.mxu1 %v506_v34 }
  0xe3   :  { %v443_v36 = vpop.f32.mrf.mxu0 }
  0xe4   :  { %v465_v37 = vpop.f32.mrf.mxu1 }
  0xe5   :  { %v444_v39 = vpop.f32.mrf.mxu0 }
  0xe6   :  { %v445_v40 = vadd.f32 %v444_v39, %v443_v36  ;;  %v466_v41 = vpop.f32.mrf.mxu1 }
  0xe7   :  { %v446_v42 = vpop.f32.mrf.mxu0  ;;  %v467_v44 = vadd.f32 %v466_v41, %v465_v37 }
  0xe8   :  { %v337_v43 = vadd.f32 %v445_v40, %v390_v38  ;;  %v468_v45 = vpop.f32.mrf.mxu1 }
  0xe9   :  { %v447_v46 = vpop.f32.mrf.mxu0 }
  0xea   :  { %v378_v47 = vadd.f32 %v467_v44, %v337_v43  ;;  %v448_v48 = vadd.f32 %v447_v46, %v446_v42  ;;  %v469_v49 = vpop.f32.mrf.mxu1 }
  0xeb   :  { %v470_v51 = vadd.f32 %v469_v49, %v468_v45 }
  0xec   :  { %384 = vst [vmem:[%s649_s3] sm:$0xff] %v378_v47  ;;  %v340_v50 = vadd.f32 %v448_v48, %v390_v38 }
  0xee   :  { %v381_v52 = vadd.f32 %v470_v51, %v340_v50 }
  0xf0   :  { %385 = vst [vmem:[%s649_s3 + $0x8] sm:$0xff] %v381_v52 }

// kernel: generic_aae_forward.9
= control target key start
LH: loop header
LB: loop body
LE: loop exit
PB: predicated region body
PF: predicated region fallthrough
CT: control target
= control target key end

     0   :  { %v426_v1 = vmov 0   ;;  %v51_v34 = vlaneseq  ;;  %s573_s1 = inlined_call_operand.vmem [shape: bf16[128,512], index: 1, kind: input, shape index: {}]   ;;  %s574_s0 = inlined_call_operand.vmem [shape: bf16[16,128], index: 0, kind: input, shape index: {}]   ;;  %s575_s2 = inlined_call_operand.vmem [shape: f32[1,512], index: 2, kind: input, shape index: {}]   ;;  %s576_s3 = inlined_call_operand.vmem [shape: f32[16,512], index: 3, kind: output, shape index: {}]  }
   0x1   :  { %v377_v0 = vld [vmem:[%s573_s1 + $0xe4] ss:$16 sps:$4 sm:$0xff]   ;;  %269 = vmatprep.mubr.bf16.mxu0 %v426_v1  ;;  %312 = vmatprep.mubr.bf16.mxu1 %v426_v1  ;;  %v379_v2 = vld [vmem:[%s573_s1 + $0xec] ss:$16 sps:$4 sm:$0xff]   ;;  %v381_v3 = vld [vmem:[%s573_s1 + $0xe0] ss:$16 sps:$4 sm:$0xff]  }
   0x2   :  { %237 = vmatprep.subr.bf16.mxu0 %v377_v0  ;;  %v382_v4 = vld [vmem:[%s573_s1 + $0xe8] ss:$16 sps:$4 sm:$0xff]   ;;  %280 = vmatprep.subr.bf16.mxu1 %v379_v2  ;;  %v383_v5 = vld [vmem:[%s573_s1 + $0xc4] ss:$16 sps:$4 sm:$0xff]   ;;  %v385_v6 = vld [vmem:[%s573_s1 + $0xcc] ss:$16 sps:$4 sm:$0xff]  }
   0x3   :  { %238 = vmatpush1.bf16.msra.mxu0 %v381_v3  ;;  %281 = vmatpush1.bf16.msra.mxu1 %v382_v4  ;;  %v387_v7 = vld [vmem:[%s573_s1 + $0xc0] ss:$16 sps:$4 sm:$0xff]   ;;  %v388_v8 = vld [vmem:[%s573_s1 + $0xc8] ss:$16 sps:$4 sm:$0xff]   ;;  %v389_v9 = vld [vmem:[%s573_s1 + $0xa4] ss:$16 sps:$4 sm:$0xff]  }
   0x4   :  { %239 = vmatprep.subr.bf16.mxu0 %v383_v5  ;;  %282 = vmatprep.subr.bf16.mxu1 %v385_v6  ;;  %v391_v10 = vld [vmem:[%s573_s1 + $0xac] ss:$16 sps:$4 sm:$0xff]   ;;  %v393_v11 = vld [vmem:[%s573_s1 + $0xa0] ss:$16 sps:$4 sm:$0xff]   ;;  %v394_v12 = vld [vmem:[%s573_s1 + $0xa8] ss:$16 sps:$4 sm:$0xff]  }
   0x5   :  { %v395_v13 = vld [vmem:[%s573_s1 + $0x84] ss:$16 sps:$4 sm:$0xff]   ;;  %v397_v14 = vld [vmem:[%s573_s1 + $0x8c] ss:$16 sps:$4 sm:$0xff]   ;;  %v399_v15 = vld [vmem:[%s573_s1 + $0x80] ss:$16 sps:$4 sm:$0xff]  }
   0x6   :  { %v400_v16 = vld [vmem:[%s573_s1 + $0x88] ss:$16 sps:$4 sm:$0xff]   ;;  %v401_v17 = vld [vmem:[%s573_s1 + $0x64] ss:$16 sps:$4 sm:$0xff]   ;;  %v403_v18 = vld [vmem:[%s573_s1 + $0x6c] ss:$16 sps:$4 sm:$0xff]  }
   0x7   :  { %240 = vmatpush1.bf16.msra.mxu0 %v387_v7  ;;  %283 = vmatpush1.bf16.msra.mxu1 %v388_v8  ;;  %v405_v19 = vld [vmem:[%s573_s1 + $0x60] ss:$16 sps:$4 sm:$0xff]   ;;  %v406_v20 = vld [vmem:[%s573_s1 + $0x68] ss:$16 sps:$4 sm:$0xff]   ;;  %v407_v21 = vld [vmem:[%s573_s1 + $0x44] ss:$16 sps:$4 sm:$0xff]  }
   0x8   :  { %241 = vmatprep.subr.bf16.mxu0 %v389_v9  ;;  %284 = vmatprep.subr.bf16.mxu1 %v391_v10  ;;  %v409_v22 = vld [vmem:[%s573_s1 + $0x4c] ss:$16 sps:$4 sm:$0xff]   ;;  %v411_v23 = vld [vmem:[%s573_s1 + $0x40] ss:$16 sps:$4 sm:$0xff]   ;;  %v412_v24 = vld [vmem:[%s573_s1 + $0x48] ss:$16 sps:$4 sm:$0xff]  }
   0x9   :  { %v413_v25 = vld [vmem:[%s573_s1 + $0x24] ss:$16 sps:$4 sm:$0xff]   ;;  %v415_v26 = vld [vmem:[%s573_s1 + $0x2c] ss:$16 sps:$4 sm:$0xff]   ;;  %v417_v27 = vld [vmem:[%s573_s1 + $0x20] ss:$16 sps:$4 sm:$0xff]  }
   0xa   :  { %v418_v28 = vld [vmem:[%s573_s1 + $0x28] ss:$16 sps:$4 sm:$0xff]   ;;  %v419_v29 = vld [vmem:[%s573_s1 + $0x4] ss:$16 sps:$4 sm:$0xff]   ;;  %v421_v30 = vld [vmem:[%s573_s1 + $0xc] ss:$16 sps:$4 sm:$0xff]  }
   0xb   :  { %242 = vmatpush1.bf16.msra.mxu0 %v393_v11  ;;  %285 = vmatpush1.bf16.msra.mxu1 %v394_v12  ;;  %v423_v31 = vld [vmem:[%s573_s1] ss:$16 sps:$4 sm:$0xff]   ;;  %v424_v32 = vld [vmem:[%s573_s1 + $0x8] ss:$16 sps:$4 sm:$0xff]   ;;  %v52_v35 = vshrl.u32 %v51_v34, 7 }
   0xc   :  { %243 = vmatprep.subr.bf16.mxu0 %v395_v13  ;;  %286 = vmatprep.subr.bf16.mxu1 %v397_v14  ;;  %v425_v33 = vld [vmem:[%s574_s0] sm:$0xff]  }
   0xd   :  { %v53_v36 = vsub.s32 0, %v52_v35  ;;  %v61_v37 = vsub.s32 2, %v52_v35  ;;  %v49_v38 = vld [vmem:[%s575_s2] sm:$0xf]  ;;  %v57_v39 = vsub.s32 1, %v52_v35  ;;  %v65_v40 = vsub.s32 3, %v52_v35 }
   0xf   :  { %244 = vmatpush1.bf16.msra.mxu0 %v399_v15  ;;  %287 = vmatpush1.bf16.msra.mxu1 %v400_v16  ;;  %v54_v41 = vrot.slane %v49_v38, %v53_v36  ;;  %v62_v42 = vrot.slane %v49_v38, %v61_v37  ;;  %v58_v43 = vrot.slane %v49_v38, %v57_v39 }
  0x10   :  { %245 = vmatprep.subr.bf16.mxu0 %v401_v17  ;;  %288 = vmatprep.subr.bf16.mxu1 %v403_v18  ;;  %v66_v44 = vrot.slane %v49_v38, %v65_v40 }
  0x13   :  { %246 = vmatpush1.bf16.msra.mxu0 %v405_v19  ;;  %289 = vmatpush1.bf16.msra.mxu1 %v406_v20 }
  0x14   :  { %247 = vmatprep.subr.bf16.mxu0 %v407_v21  ;;  %290 = vmatprep.subr.bf16.mxu1 %v409_v22 }
  0x17   :  { %248 = vmatpush1.bf16.msra.mxu0 %v411_v23  ;;  %291 = vmatpush1.bf16.msra.mxu1 %v412_v24 }
  0x18   :  { %249 = vmatprep.subr.bf16.mxu0 %v413_v25  ;;  %292 = vmatprep.subr.bf16.mxu1 %v415_v26 }
  0x1b   :  { %250 = vmatpush1.bf16.msra.mxu0 %v417_v27  ;;  %293 = vmatpush1.bf16.msra.mxu1 %v418_v28 }
  0x1c   :  { %251 = vmatprep.subr.bf16.mxu0 %v419_v29  ;;  %294 = vmatprep.subr.bf16.mxu1 %v421_v30 }
  0x1f   :  { %252 = vmatpush1.bf16.msra.mxu0 %v423_v31  ;;  %295 = vmatpush1.bf16.msra.mxu1 %v424_v32 }
  0x22   :  { %270 = vmatmul.mubr.bf16.vlgmr.msra.gmra.mxu0 %v425_v33  ;;  %313 = vmatmul.mubr.bf16.vlgmr.msra.gmra.mxu1 %v425_v33 }
  0xe2   :  { %v271_v45 = vpop.f32.mrf.mxu0  ;;  %v314_v46 = vpop.f32.mrf.mxu1 }
  0xe3   :  { %v272_v47 = vadd.f32 %v271_v45, %v54_v41  ;;  %v315_v48 = vadd.f32 %v314_v46, %v62_v42 }
  0xe4   :  { %v273_v49 = vpop.f32.mrf.mxu0  ;;  %v316_v50 = vpop.f32.mrf.mxu1 }
  0xe5   :  { %v323_v51 = vmax.f32 %v272_v47, 0.0  ;;  %v325_v52 = vmax.f32 %v315_v48, 0.0  ;;  %v274_v53 = vadd.f32 %v273_v49, %v58_v43  ;;  %v317_v54 = vadd.f32 %v316_v50, %v66_v44 }
  0xe6   :  { %v275_v55 = vpop.f32.mrf.mxu0  ;;  %v318_v56 = vpop.f32.mrf.mxu1 }
  0xe7   :  { %331 = vst [vmem:[%s576_s3] sm:$0xff] %v323_v51  ;;  %333 = vst [vmem:[%s576_s3 + $0x10] sm:$0xff] %v325_v52  ;;  %v324_v57 = vmax.f32 %v274_v53, 0.0  ;;  %v326_v58 = vmax.f32 %v317_v54, 0.0  ;;  %v276_v59 = vadd.f32 %v275_v55, %v54_v41  ;;  %v319_v60 = vadd.f32 %v318_v56, %v62_v42 }
  0xe8   :  { %v277_v61 = vpop.f32.mrf.mxu0  ;;  %v320_v62 = vpop.f32.mrf.mxu1 }
  0xe9   :  { %332 = vst [vmem:[%s576_s3 + $0x8] sm:$0xff] %v324_v57  ;;  %334 = vst [vmem:[%s576_s3 + $0x18] sm:$0xff] %v326_v58  ;;  %v327_v63 = vmax.f32 %v276_v59, 0.0  ;;  %v329_v0 = vmax.f32 %v319_v60, 0.0  ;;  %v278_v1 = vadd.f32 %v277_v61, %v58_v43  ;;  %v321_v2 = vadd.f32 %v320_v62, %v66_v44 }
  0xeb   :  { %335 = vst [vmem:[%s576_s3 + $0x20] sm:$0xff] %v327_v63  ;;  %337 = vst [vmem:[%s576_s3 + $0x30] sm:$0xff] %v329_v0  ;;  %v328_v3 = vmax.f32 %v278_v1, 0.0  ;;  %v330_v4 = vmax.f32 %v321_v2, 0.0 }
  0xed   :  { %336 = vst [vmem:[%s576_s3 + $0x28] sm:$0xff] %v328_v3  ;;  %338 = vst [vmem:[%s576_s3 + $0x38] sm:$0xff] %v330_v4 }

// kernel: generic_aae_forward.10
= control target key start
LH: loop header
LB: loop body
LE: loop exit
PB: predicated region body
PF: predicated region fallthrough
CT: control target
= control target key end

     0   :  { %s610_s1 = inlined_call_operand.vmem [shape: bf16[384,128], index: 1, kind: input, shape index: {}]   ;;  %s611_s0 = inlined_call_operand.vmem [shape: bf16[32,384], index: 0, kind: input, shape index: {}]   ;;  %s612_s2 = inlined_call_operand.vmem [shape: f32[1,128], index: 2, kind: input, shape index: {}]   ;;  %s613_s3 = inlined_call_operand.vmem [shape: f32[32,128], index: 3, kind: output, shape index: {}]  }
   0x1   :  { %v453_v0 = vld [vmem:[%s610_s1 + $0x78] sm:$0xff]   ;;  %v455_v2 = vld [vmem:[%s610_s1 + $0x70] sm:$0xff]   ;;  %v458_v5 = vld [vmem:[%s610_s1 + $0x68] sm:$0xff]  }
   0x2   :  { %v454_v1 = vld [vmem:[%s610_s1 + $0x38] sm:$0xff]   ;;  %395 = vmatprep.subr.bf16.mxu0 %v453_v0  ;;  %v457_v4 = vld [vmem:[%s610_s1 + $0x30] sm:$0xff]   ;;  %v460_v7 = vld [vmem:[%s610_s1 + $0x28] sm:$0xff]  }
   0x3   :  { %396 = vmatpush3.bf16.msra.mxu0 %v454_v1  ;;  %v456_v3 = vld [vmem:[%s610_s1 + $0xb8] sm:$0xff]   ;;  %v459_v6 = vld [vmem:[%s610_s1 + $0xb0] sm:$0xff]   ;;  %v461_v8 = vld [vmem:[%s610_s1 + $0x60] sm:$0xff]  }
   0x4   :  { %397 = vmatprep.subr.bf16.mxu0 %v455_v2  ;;  %433 = vmatprep.subr.bf16.mxu1 %v456_v3  ;;  %v462_v9 = vld [vmem:[%s610_s1 + $0xa8] sm:$0xff]   ;;  %v463_v10 = vld [vmem:[%s610_s1 + $0x20] sm:$0xff]   ;;  %v464_v11 = vld [vmem:[%s610_s1 + $0x58] sm:$0xff]  }
   0x5   :  { %434 = vmatpush3.bf16.msra.mxu1 %v456_v3  ;;  %v465_v12 = vld [vmem:[%s610_s1 + $0xa0] sm:$0xff]   ;;  %v466_v13 = vld [vmem:[%s610_s1 + $0x18] sm:$0xff]   ;;  %v467_v15 = vld [vmem:[%s610_s1 + $0x50] sm:$0xff]  }
   0x6   :  { %435 = vmatprep.subr.bf16.mxu1 %v459_v6  ;;  %v468_v14 = vld [vmem:[%s610_s1 + $0x98] sm:$0xff]   ;;  %v469_v16 = vld [vmem:[%s610_s1 + $0x10] sm:$0xff]   ;;  %v470_v18 = vld [vmem:[%s610_s1 + $0x48] sm:$0xff]  }
   0x7   :  { %398 = vmatpush3.bf16.msra.mxu0 %v457_v4  ;;  %v471_v17 = vld [vmem:[%s610_s1 + $0x90] sm:$0xff]   ;;  %v472_v19 = vld [vmem:[%s610_s1 + $0x8] sm:$0xff]   ;;  %v473_v20 = vld [vmem:[%s610_s1 + $0x40] sm:$0xff]  }
   0x8   :  { %399 = vmatprep.subr.bf16.mxu0 %v458_v5  ;;  %v474_v21 = vld [vmem:[%s610_s1 + $0x88] sm:$0xff]   ;;  %v478_v22 = vld [vmem:[%s611_s0 + $0x4] ss:$12 sps:$4 sm:$0xff]   ;;  %v364_v32 = vld [vmem:[%s612_s2] ss:$0 sm:$0xff] }
   0x9   :  { %436 = vmatpush3.bf16.msra.mxu1 %v459_v6  ;;  %v475_v23 = vld [vmem:[%s610_s1] sm:$0xff]   ;;  %286 = vmatprep.mubr.bf16.mxu0 %v478_v22  ;;  %v480_v24 = vld [vmem:[%s611_s0 + $0x8] ss:$12 sps:$4 sm:$0xff]  }
   0xa   :  { %437 = vmatprep.subr.bf16.mxu1 %v462_v9  ;;  %v479_v25 = vld [vmem:[%s610_s1 + $0x80] sm:$0xff]   ;;  %449 = vmatprep.mubr.bf16.mxu1 %v480_v24  ;;  %v482_v27 = vld [vmem:[%s611_s0 + $0x1c] ss:$12 sps:$4 sm:$0xff]  }
   0xb   :  { %400 = vmatpush3.bf16.msra.mxu0 %v460_v7  ;;  %v476_v26 = vld [vmem:[%s611_s0] ss:$12 sps:$4 sm:$0xff]   ;;  %v484_v29 = vld [vmem:[%s611_s0 + $0x18] ss:$12 sps:$4 sm:$0xff]  }
   0xc   :  { %401 = vmatprep.subr.bf16.mxu0 %v461_v8  ;;  %v481_v28 = vld [vmem:[%s611_s0 + $0x20] ss:$12 sps:$4 sm:$0xff]  }
   0xd   :  { %438 = vmatpush3.bf16.msra.mxu1 %v462_v9 }
   0xe   :  { %439 = vmatprep.subr.bf16.mxu1 %v465_v12 }
   0xf   :  { %402 = vmatpush3.bf16.msra.mxu0 %v463_v10 }
  0x10   :  { %403 = vmatprep.subr.bf16.mxu0 %v464_v11 }
  0x11   :  { %440 = vmatpush3.bf16.msra.mxu1 %v465_v12 }
  0x12   :  { %441 = vmatprep.subr.bf16.mxu1 %v468_v14 }
  0x13   :  { %404 = vmatpush3.bf16.msra.mxu0 %v466_v13 }
  0x14   :  { %405 = vmatprep.subr.bf16.mxu0 %v467_v15 }
  0x15   :  { %442 = vmatpush3.bf16.msra.mxu1 %v468_v14 }
  0x16   :  { %443 = vmatprep.subr.bf16.mxu1 %v471_v17 }
  0x17   :  { %406 = vmatpush3.bf16.msra.mxu0 %v469_v16 }
  0x18   :  { %407 = vmatprep.subr.bf16.mxu0 %v470_v18 }
  0x19   :  { %444 = vmatpush3.bf16.msra.mxu1 %v471_v17 }
  0x1a   :  { %445 = vmatprep.subr.bf16.mxu1 %v474_v21 }
  0x1b   :  { %408 = vmatpush3.bf16.msra.mxu0 %v472_v19 }
  0x1c   :  { %409 = vmatprep.subr.bf16.mxu0 %v473_v20 }
  0x1d   :  { %446 = vmatpush3.bf16.msra.mxu1 %v474_v21 }
  0x1e   :  { %447 = vmatprep.subr.bf16.mxu1 %v479_v25 }
  0x1f   :  { %410 = vmatpush3.bf16.msra.mxu0 %v475_v23 }
  0x21   :  { %448 = vmatpush3.bf16.msra.mxu1 %v479_v25 }
  0x22   :  { %287 = vmatmul.mubr.bf16.vlgmr.msra.gmra.mxu0 %v476_v26 }
  0x23   :  { %294 = vmatprep.mubr.bf16.mxu0 %v482_v27 }
  0x24   :  { %450 = vmatmul.mubr.bf16.vlgmr.msra.gmra.mxu1 %v481_v28 }
  0x2a   :  { %295 = vmatmul.mubr.bf16.gmra.mxu0 %v484_v29 }
  0xe2   :  { %v411_v30 = vpop.f32.mrf.mxu0 }
  0xe4   :  { %v412_v31 = vpop.f32.mrf.mxu0  ;;  %v451_v34 = vpop.f32.mrf.mxu1 }
  0xe5   :  { %v413_v33 = vadd.f32 %v412_v31, %v411_v30 }
  0xe6   :  { %v414_v35 = vpop.f32.mrf.mxu0  ;;  %v337_v37 = vpop.f32.mrf.mxu1 }
  0xe7   :  { %v289_v36 = vadd.f32 %v413_v33, %v364_v32 }
  0xe8   :  { %v415_v38 = vpop.f32.mrf.mxu0  ;;  %v452_v41 = vpop.f32.mrf.mxu1 }
  0xe9   :  { %v416_v39 = vadd.f32 %v415_v38, %v414_v35  ;;  %v338_v40 = vadd.f32 %v337_v37, %v289_v36 }
  0xea   :  { %v417_v42 = vpop.f32.mrf.mxu0  ;;  %v340_v45 = vpop.f32.mrf.mxu1 }
  0xeb   :  { %v352_v43 = vmax.f32 %v338_v40, 0.0  ;;  %v292_v44 = vadd.f32 %v416_v39, %v364_v32 }
  0xec   :  { %v418_v46 = vpop.f32.mrf.mxu0 }
  0xed   :  { %356 = vst [vmem:[%s613_s3] sm:$0xff] %v352_v43  ;;  %v419_v47 = vadd.f32 %v418_v46, %v417_v42  ;;  %v341_v48 = vadd.f32 %v340_v45, %v292_v44 }
  0xee   :  { %v420_v49 = vpop.f32.mrf.mxu0 }
  0xef   :  { %v297_v50 = vadd.f32 %v419_v47, %v364_v32  ;;  %v353_v51 = vmax.f32 %v341_v48, 0.0 }
  0xf0   :  { %v421_v52 = vpop.f32.mrf.mxu0 }
  0xf1   :  { %v346_v53 = vadd.f32 %v451_v34, %v297_v50  ;;  %357 = vst [vmem:[%s613_s3 + $0x8] sm:$0xff] %v353_v51  ;;  %v422_v54 = vadd.f32 %v421_v52, %v420_v49 }
  0xf3   :  { %v354_v55 = vmax.f32 %v346_v53, 0.0  ;;  %v300_v56 = vadd.f32 %v422_v54, %v364_v32 }
  0xf5   :  { %358 = vst [vmem:[%s613_s3 + $0x10] sm:$0xff] %v354_v55  ;;  %v349_v57 = vadd.f32 %v452_v41, %v300_v56 }
  0xf7   :  { %v355_v58 = vmax.f32 %v349_v57, 0.0 }
  0xf9   :  { %359 = vst [vmem:[%s613_s3 + $0x18] sm:$0xff] %v355_v58 }

// kernel: generic_aae_forward.11
= control target key start
LH: loop header
LB: loop body
LE: loop exit
PB: predicated region body
PF: predicated region fallthrough
CT: control target
= control target key end

     0   :  { %s861_s1 = inlined_call_operand.vmem [shape: bf16[256,128], index: 1, kind: input, shape index: {}]   ;;  %s862_s0 = inlined_call_operand.vmem [shape: bf16[128,256], index: 0, kind: input, shape index: {}]   ;;  %s863_s2 = inlined_call_operand.vmem [shape: f32[1,128], index: 2, kind: input, shape index: {}]   ;;  %s864_s3 = inlined_call_operand.vmem [shape: f32[128,128], index: 3, kind: output, shape index: {}]  }
   0x1   :  { %v572_v0 = vld [vmem:[%s861_s1 + $0x78] sm:$0xff]   ;;  %v574_v2 = vld [vmem:[%s861_s1 + $0x70] sm:$0xff]   ;;  %v576_v4 = vld [vmem:[%s861_s1 + $0x68] sm:$0xff]  }
   0x2   :  { %v573_v1 = vld [vmem:[%s861_s1 + $0x38] sm:$0xff]   ;;  %492 = vmatprep.subr.bf16.mxu0 %v572_v0  ;;  %556 = vmatprep.subr.bf16.mxu1 %v572_v0  ;;  %v575_v3 = vld [vmem:[%s861_s1 + $0x30] sm:$0xff]   ;;  %v577_v5 = vld [vmem:[%s861_s1 + $0x28] sm:$0xff]  }
   0x3   :  { %493 = vmatpush3.bf16.msra.mxu0 %v573_v1  ;;  %564 = vmatpush3.bf16.msra.mxu1 %v573_v1  ;;  %v578_v6 = vld [vmem:[%s861_s1 + $0x60] sm:$0xff]   ;;  %v580_v8 = vld [vmem:[%s861_s1 + $0x58] sm:$0xff]   ;;  %v582_v10 = vld [vmem:[%s861_s1 + $0x50] sm:$0xff]  }
   0x4   :  { %494 = vmatprep.subr.bf16.mxu0 %v574_v2  ;;  %557 = vmatprep.subr.bf16.mxu1 %v574_v2  ;;  %v579_v7 = vld [vmem:[%s861_s1 + $0x20] sm:$0xff]   ;;  %v581_v9 = vld [vmem:[%s861_s1 + $0x18] sm:$0xff]   ;;  %v583_v13 = vld [vmem:[%s861_s1 + $0x10] sm:$0xff]  }
   0x5   :  { %v590_v11 = vld [vmem:[%s862_s0 + $0x4] ss:$8 sps:$4 sm:$0xff]   ;;  %v588_v18 = vld [vmem:[%s862_s0] ss:$8 sps:$4 sm:$0xff]   ;;  %v594_v20 = vld [vmem:[%s862_s0 + $0x14] ss:$8 sps:$4 sm:$0xff]  }
   0x6   :  { %v593_v12 = vld [vmem:[%s862_s0 + $0x44] ss:$8 sps:$4 sm:$0xff]   ;;  %278 = vmatprep.mubr.bf16.mxu0 %v590_v11  ;;  %v591_v19 = vld [vmem:[%s862_s0 + $0x40] ss:$8 sps:$4 sm:$0xff]   ;;  %v596_v21 = vld [vmem:[%s862_s0 + $0x54] ss:$8 sps:$4 sm:$0xff]  }
   0x7   :  { %495 = vmatpush3.bf16.msra.mxu0 %v575_v3  ;;  %565 = vmatpush3.bf16.msra.mxu1 %v575_v3  ;;  %v584_v14 = vld [vmem:[%s861_s1 + $0x48] sm:$0xff]   ;;  %v586_v16 = vld [vmem:[%s861_s1 + $0x40] sm:$0xff]   ;;  %v598_v22 = vld [vmem:[%s862_s0 + $0x10] ss:$8 sps:$4 sm:$0xff]  }
   0x8   :  { %496 = vmatprep.subr.bf16.mxu0 %v576_v4  ;;  %558 = vmatprep.subr.bf16.mxu1 %v576_v4  ;;  %v585_v15 = vld [vmem:[%s861_s1 + $0x8] sm:$0xff]   ;;  %v587_v17 = vld [vmem:[%s861_s1] sm:$0xff]   ;;  %v599_v23 = vld [vmem:[%s862_s0 + $0x50] ss:$8 sps:$4 sm:$0xff]  }
   0x9   :  { %310 = vmatprep.mubr.bf16.mxu1 %v593_v12  ;;  %v600_v24 = vld [vmem:[%s862_s0 + $0x24] ss:$8 sps:$4 sm:$0xff]   ;;  %v604_v26 = vld [vmem:[%s862_s0 + $0x20] ss:$8 sps:$4 sm:$0xff]   ;;  %v606_v28 = vld [vmem:[%s862_s0 + $0x34] ss:$8 sps:$4 sm:$0xff]  }
   0xa   :  { %v602_v25 = vld [vmem:[%s862_s0 + $0x64] ss:$8 sps:$4 sm:$0xff]   ;;  %v605_v27 = vld [vmem:[%s862_s0 + $0x60] ss:$8 sps:$4 sm:$0xff]   ;;  %v608_v29 = vld [vmem:[%s862_s0 + $0x74] ss:$8 sps:$4 sm:$0xff]  }
   0xb   :  { %497 = vmatpush3.bf16.msra.mxu0 %v577_v5  ;;  %566 = vmatpush3.bf16.msra.mxu1 %v577_v5  ;;  %v610_v30 = vld [vmem:[%s862_s0 + $0x30] ss:$8 sps:$4 sm:$0xff]   ;;  %v795_v34 = vld [vmem:[%s863_s2] ss:$0 sm:$0xff] }
   0xc   :  { %498 = vmatprep.subr.bf16.mxu0 %v578_v6  ;;  %559 = vmatprep.subr.bf16.mxu1 %v578_v6  ;;  %v611_v31 = vld [vmem:[%s862_s0 + $0x70] ss:$8 sps:$4 sm:$0xff]  }
   0xf   :  { %499 = vmatpush3.bf16.msra.mxu0 %v579_v7  ;;  %567 = vmatpush3.bf16.msra.mxu1 %v579_v7 }
  0x10   :  { %500 = vmatprep.subr.bf16.mxu0 %v580_v8  ;;  %560 = vmatprep.subr.bf16.mxu1 %v580_v8 }
  0x13   :  { %501 = vmatpush3.bf16.msra.mxu0 %v581_v9  ;;  %568 = vmatpush3.bf16.msra.mxu1 %v581_v9 }
  0x14   :  { %502 = vmatprep.subr.bf16.mxu0 %v582_v10  ;;  %561 = vmatprep.subr.bf16.mxu1 %v582_v10 }
  0x17   :  { %503 = vmatpush3.bf16.msra.mxu0 %v583_v13  ;;  %569 = vmatpush3.bf16.msra.mxu1 %v583_v13 }
  0x18   :  { %504 = vmatprep.subr.bf16.mxu0 %v584_v14  ;;  %562 = vmatprep.subr.bf16.mxu1 %v584_v14 }
  0x1b   :  { %505 = vmatpush3.bf16.msra.mxu0 %v585_v15  ;;  %570 = vmatpush3.bf16.msra.mxu1 %v585_v15 }
  0x1c   :  { %506 = vmatprep.subr.bf16.mxu0 %v586_v16  ;;  %563 = vmatprep.subr.bf16.mxu1 %v586_v16 }
  0x1f   :  { %507 = vmatpush3.bf16.msra.mxu0 %v587_v17  ;;  %571 = vmatpush3.bf16.msra.mxu1 %v587_v17 }
  0x22   :  { %279 = vmatmul.mubr.bf16.vlgmr.msra.gmra.mxu0 %v588_v18  ;;  %311 = vmatmul.mubr.bf16.vlgmr.msra.gmra.mxu1 %v591_v19 }
  0x23   :  { %286 = vmatprep.mubr.bf16.mxu0 %v594_v20  ;;  %318 = vmatprep.mubr.bf16.mxu1 %v596_v21 }
  0x2a   :  { %287 = vmatmul.mubr.bf16.gmra.mxu0 %v598_v22  ;;  %319 = vmatmul.mubr.bf16.gmra.mxu1 %v599_v23 }
  0x2b   :  { %294 = vmatprep.mubr.bf16.mxu0 %v600_v24  ;;  %326 = vmatprep.mubr.bf16.mxu1 %v602_v25 }
  0x32   :  { %295 = vmatmul.mubr.bf16.gmra.mxu0 %v604_v26  ;;  %327 = vmatmul.mubr.bf16.gmra.mxu1 %v605_v27 }
  0x33   :  { %302 = vmatprep.mubr.bf16.mxu0 %v606_v28  ;;  %334 = vmatprep.mubr.bf16.mxu1 %v608_v29 }
  0x3a   :  { %303 = vmatmul.mubr.bf16.gmra.mxu0 %v610_v30  ;;  %335 = vmatmul.mubr.bf16.gmra.mxu1 %v611_v31 }
  0xe2   :  { %v508_v32 = vpop.f32.mrf.mxu0  ;;  %v532_v33 = vpop.f32.mrf.mxu1 }
  0xe4   :  { %v509_v35 = vpop.f32.mrf.mxu0  ;;  %v533_v36 = vpop.f32.mrf.mxu1 }
  0xe5   :  { %v510_v37 = vadd.f32 %v509_v35, %v508_v32  ;;  %v534_v38 = vadd.f32 %v533_v36, %v532_v33 }
  0xe6   :  { %v511_v39 = vpop.f32.mrf.mxu0  ;;  %v535_v40 = vpop.f32.mrf.mxu1 }
  0xe7   :  { %v281_v41 = vadd.f32 %v510_v37, %v795_v34  ;;  %v313_v42 = vadd.f32 %v534_v38, %v795_v34 }
  0xe8   :  { %v512_v43 = vpop.f32.mrf.mxu0  ;;  %v536_v44 = vpop.f32.mrf.mxu1 }
  0xe9   :  { %v343_v45 = vsub.f32 0.0, %v281_v41  ;;  %v351_v46 = vsub.f32 0.0, %v313_v42  ;;  %v513_v47 = vadd.f32 %v512_v43, %v511_v39  ;;  %v537_v48 = vadd.f32 %v536_v44, %v535_v40 }
  0xea   :  { %v514_v49 = vpop.f32.mrf.mxu0  ;;  %v538_v50 = vpop.f32.mrf.mxu1 }
  0xeb   :  { %v359_v51 = vmul.f32 1.442695, %v343_v45  ;;  %v375_v52 = vmul.f32 1.442695, %v351_v46  ;;  %v284_v53 = vadd.f32 %v513_v47, %v795_v34  ;;  %v316_v54 = vadd.f32 %v537_v48, %v795_v34 }
  0xec   :  { %v515_v55 = vpop.f32.mrf.mxu0  ;;  %v539_v56 = vpop.f32.mrf.mxu1 }
  0xed   :  { %612 = vpow2.f32 %v359_v51  ;;  %v344_v57 = vsub.f32 0.0, %v284_v53  ;;  %v352_v58 = vsub.f32 0.0, %v316_v54  ;;  %v516_v59 = vadd.f32 %v515_v55, %v514_v49 }
  0xee   :  { %614 = vpow2.f32 %v375_v52  ;;  %v540_v60 = vadd.f32 %v539_v56, %v538_v50  ;;  %v517_v61 = vpop.f32.mrf.mxu0  ;;  %v541_v62 = vpop.f32.mrf.mxu1 }
  0xef   :  { %v361_v63 = vmul.f32 1.442695, %v344_v57  ;;  %v377_v0 = vmul.f32 1.442695, %v352_v58  ;;  %v289_v1 = vadd.f32 %v516_v59, %v795_v34 }
  0xf0   :  { %v321_v2 = vadd.f32 %v540_v60, %v795_v34  ;;  %v518_v3 = vpop.f32.mrf.mxu0  ;;  %v542_v4 = vpop.f32.mrf.mxu1 }
  0xf1   :  { %616 = vpow2.f32 %v361_v63  ;;  %v345_v5 = vsub.f32 0.0, %v289_v1  ;;  %v519_v6 = vadd.f32 %v518_v3, %v517_v61  ;;  %v543_v7 = vadd.f32 %v542_v4, %v541_v62 }
  0xf2   :  { %618 = vpow2.f32 %v377_v0  ;;  %v353_v8 = vsub.f32 0.0, %v321_v2  ;;  %v520_v9 = vpop.f32.mrf.mxu0  ;;  %v544_v10 = vpop.f32.mrf.mxu1 }
  0xf3   :  { %v363_v11 = vmul.f32 1.442695, %v345_v5  ;;  %v292_v12 = vadd.f32 %v519_v6, %v795_v34  ;;  %v324_v13 = vadd.f32 %v543_v7, %v795_v34 }
  0xf4   :  { %v379_v14 = vmul.f32 1.442695, %v353_v8  ;;  %v521_v15 = vpop.f32.mrf.mxu0  ;;  %v545_v16 = vpop.f32.mrf.mxu1 }
  0xf5   :  { %620 = vpow2.f32 %v363_v11  ;;  %v346_v17 = vsub.f32 0.0, %v292_v12  ;;  %v354_v18 = vsub.f32 0.0, %v324_v13  ;;  %v522_v19 = vadd.f32 %v521_v15, %v520_v9 }
  0xf6   :  { %622 = vpow2.f32 %v379_v14  ;;  %v546_v20 = vadd.f32 %v545_v16, %v544_v10  ;;  %v523_v21 = vpop.f32.mrf.mxu0  ;;  %v547_v22 = vpop.f32.mrf.mxu1 }
  0xf7   :  { %v365_v23 = vmul.f32 1.442695, %v346_v17  ;;  %v381_v24 = vmul.f32 1.442695, %v354_v18  ;;  %v297_v25 = vadd.f32 %v522_v19, %v795_v34 }
  0xf8   :  { %v329_v26 = vadd.f32 %v546_v20, %v795_v34  ;;  %v524_v27 = vpop.f32.mrf.mxu0  ;;  %v548_v28 = vpop.f32.mrf.mxu1 }
  0xf9   :  { %624 = vpow2.f32 %v365_v23  ;;  %v347_v29 = vsub.f32 0.0, %v297_v25  ;;  %v525_v30 = vadd.f32 %v524_v27, %v523_v21  ;;  %v549_v31 = vadd.f32 %v548_v28, %v547_v22 }
  0xfa   :  { %v613_v32 = vpop.eup %612  ;;  %626 = vpow2.f32 %v381_v24  ;;  %v355_v33 = vsub.f32 0.0, %v329_v26  ;;  %v526_v35 = vpop.f32.mrf.mxu0 }
  0xfb   :  { %v550_v36 = vpop.f32.mrf.mxu1  ;;  %v615_v37 = vpop.eup %614  ;;  %v391_v38 = vadd.f32 1.0, %v613_v32  ;;  %v367_v39 = vmul.f32 1.442695, %v347_v29  ;;  %v300_v40 = vadd.f32 %v525_v30, %v795_v34  ;;  %v332_v41 = vadd.f32 %v549_v31, %v795_v34 }
  0xfc   :  { %v399_v42 = vadd.f32 1.0, %v615_v37  ;;  %v383_v43 = vmul.f32 1.442695, %v355_v33  ;;  %v527_v44 = vpop.f32.mrf.mxu0 }
  0xfd   :  { %v551_v45 = vpop.f32.mrf.mxu1  ;;  %628 = vrcp.f32 %v391_v38  ;;  %v348_v46 = vsub.f32 0.0, %v300_v40  ;;  %v356_v47 = vsub.f32 0.0, %v332_v41  ;;  %v528_v48 = vadd.f32 %v527_v44, %v526_v35 }
  0xfe   :  { %v617_v49 = vpop.eup %616  ;;  %630 = vrcp.f32 %v399_v42  ;;  %v552_v50 = vadd.f32 %v551_v45, %v550_v36  ;;  %v529_v51 = vpop.f32.mrf.mxu0 }
  0xff   :  { %v553_v52 = vpop.f32.mrf.mxu1  ;;  %v619_v53 = vpop.eup %618  ;;  %v392_v54 = vadd.f32 1.0, %v617_v49  ;;  %632 = vpow2.f32 %v367_v39  ;;  %v369_v55 = vmul.f32 1.442695, %v348_v46  ;;  %v385_v56 = vmul.f32 1.442695, %v356_v47 }
 0x100   :  { %v400_v57 = vadd.f32 1.0, %v619_v53  ;;  %634 = vpow2.f32 %v383_v43  ;;  %v305_v58 = vadd.f32 %v528_v48, %v795_v34  ;;  %v337_v59 = vadd.f32 %v552_v50, %v795_v34  ;;  %v530_v60 = vpop.f32.mrf.mxu0 }
 0x101   :  { %v554_v61 = vpop.f32.mrf.mxu1  ;;  %636 = vrcp.f32 %v392_v54  ;;  %v531_v62 = vadd.f32 %v530_v60, %v529_v51 }
 0x102   :  { %v555_v63 = vadd.f32 %v554_v61, %v553_v52  ;;  %v621_v0 = vpop.eup %620  ;;  %638 = vrcp.f32 %v400_v57  ;;  %v349_v1 = vsub.f32 0.0, %v305_v58  ;;  %v357_v2 = vsub.f32 0.0, %v337_v59 }
 0x103   :  { %v623_v3 = vpop.eup %622  ;;  %v393_v4 = vadd.f32 1.0, %v621_v0  ;;  %640 = vpow2.f32 %v369_v55  ;;  %v308_v5 = vadd.f32 %v531_v62, %v795_v34 }
 0x104   :  { %v340_v6 = vadd.f32 %v555_v63, %v795_v34  ;;  %v401_v7 = vadd.f32 1.0, %v623_v3  ;;  %642 = vpow2.f32 %v385_v56  ;;  %v371_v8 = vmul.f32 1.442695, %v349_v1 }
 0x105   :  { %v387_v9 = vmul.f32 1.442695, %v357_v2  ;;  %644 = vrcp.f32 %v393_v4  ;;  %v350_v10 = vsub.f32 0.0, %v308_v5 }
 0x106   :  { %v358_v11 = vsub.f32 0.0, %v340_v6  ;;  %v625_v12 = vpop.eup %624  ;;  %646 = vrcp.f32 %v401_v7 }
 0x107   :  { %v627_v13 = vpop.eup %626  ;;  %v394_v14 = vadd.f32 1.0, %v625_v12  ;;  %648 = vpow2.f32 %v371_v8  ;;  %v373_v15 = vmul.f32 1.442695, %v350_v10 }
 0x108   :  { %v402_v16 = vadd.f32 1.0, %v627_v13  ;;  %650 = vpow2.f32 %v387_v9  ;;  %v389_v17 = vmul.f32 1.442695, %v358_v11 }
 0x109   :  { %652 = vrcp.f32 %v394_v14 }
 0x10a   :  { %v629_v18 = vpop.eup %628  ;;  %654 = vrcp.f32 %v402_v16 }
 0x10b   :  { %v631_v34 = vpop.eup %630  ;;  %439 = vst [vmem:[%s864_s3] sm:$0xff] %v629_v18  ;;  %656 = vpow2.f32 %v373_v15 }
 0x10c   :  { %v633_v19 = vpop.eup %632  ;;  %447 = vst [vmem:[%s864_s3 + $0x40] sm:$0xff] %v631_v34  ;;  %658 = vpow2.f32 %v389_v17 }
 0x10d   :  { %v635_v20 = vpop.eup %634  ;;  %v395_v21 = vadd.f32 1.0, %v633_v19 }
 0x10e   :  { %v637_v22 = vpop.eup %636  ;;  %v403_v23 = vadd.f32 1.0, %v635_v20 }
 0x10f   :  { %v639_v24 = vpop.eup %638  ;;  %440 = vst [vmem:[%s864_s3 + $0x8] sm:$0xff] %v637_v22  ;;  %660 = vrcp.f32 %v395_v21 }
 0x110   :  { %v641_v25 = vpop.eup %640  ;;  %448 = vst [vmem:[%s864_s3 + $0x48] sm:$0xff] %v639_v24  ;;  %662 = vrcp.f32 %v403_v23 }
 0x111   :  { %v643_v26 = vpop.eup %642  ;;  %v396_v27 = vadd.f32 1.0, %v641_v25 }
 0x112   :  { %v645_v28 = vpop.eup %644  ;;  %v404_v29 = vadd.f32 1.0, %v643_v26 }
 0x113   :  { %v647_v30 = vpop.eup %646  ;;  %441 = vst [vmem:[%s864_s3 + $0x10] sm:$0xff] %v645_v28  ;;  %664 = vrcp.f32 %v396_v27 }
 0x114   :  { %v649_v31 = vpop.eup %648  ;;  %449 = vst [vmem:[%s864_s3 + $0x50] sm:$0xff] %v647_v30  ;;  %666 = vrcp.f32 %v404_v29 }
 0x115   :  { %v651_v32 = vpop.eup %650  ;;  %v397_v33 = vadd.f32 1.0, %v649_v31 }
 0x116   :  { %v653_v35 = vpop.eup %652  ;;  %v405_v36 = vadd.f32 1.0, %v651_v32 }
 0x117   :  { %v655_v37 = vpop.eup %654  ;;  %442 = vst [vmem:[%s864_s3 + $0x18] sm:$0xff] %v653_v35  ;;  %668 = vrcp.f32 %v397_v33 }
 0x118   :  { %v657_v38 = vpop.eup %656  ;;  %450 = vst [vmem:[%s864_s3 + $0x58] sm:$0xff] %v655_v37  ;;  %670 = vrcp.f32 %v405_v36 }
 0x119   :  { %v659_v39 = vpop.eup %658  ;;  %v398_v40 = vadd.f32 1.0, %v657_v38 }
 0x11a   :  { %v406_v41 = vadd.f32 1.0, %v659_v39 }
 0x11b   :  { %672 = vrcp.f32 %v398_v40 }
 0x11c   :  { %v661_v42 = vpop.eup %660  ;;  %674 = vrcp.f32 %v406_v41 }
 0x11d   :  { %v663_v43 = vpop.eup %662  ;;  %443 = vst [vmem:[%s864_s3 + $0x20] sm:$0xff] %v661_v42 }
 0x11e   :  { %451 = vst [vmem:[%s864_s3 + $0x60] sm:$0xff] %v663_v43 }
 0x120   :  { %v665_v44 = vpop.eup %664 }
 0x121   :  { %v667_v45 = vpop.eup %666  ;;  %444 = vst [vmem:[%s864_s3 + $0x28] sm:$0xff] %v665_v44 }
 0x122   :  { %452 = vst [vmem:[%s864_s3 + $0x68] sm:$0xff] %v667_v45 }
 0x124   :  { %v669_v46 = vpop.eup %668 }
 0x125   :  { %v671_v47 = vpop.eup %670  ;;  %445 = vst [vmem:[%s864_s3 + $0x30] sm:$0xff] %v669_v46 }
 0x126   :  { %453 = vst [vmem:[%s864_s3 + $0x70] sm:$0xff] %v671_v47 }
 0x128   :  { %v673_v48 = vpop.eup %672 }
 0x129   :  { %v675_v49 = vpop.eup %674  ;;  %446 = vst [vmem:[%s864_s3 + $0x38] sm:$0xff] %v673_v48 }
 0x12a   :  { %454 = vst [vmem:[%s864_s3 + $0x78] sm:$0xff] %v675_v49 }

</bundles_post_ra>
